<compile_context>
chip_gen: v5e
topology: v5e:2x2
jax: 0.10.0
libtpu: 0.0.40
codegen_flags: <defaults>
</compile_context>

<pallas_src>
import math
import numpy as np
import jax
import jax.numpy as jnp
from jax import lax
from jax.experimental import pallas as pl
from jax.experimental.pallas import tpu as pltpu

# ---------------- config ----------------
B = 2
H = W = 4
P = H * W                 # 16 spatial tokens per image
N = P + 1                 # 17 tokens (cls + patches)
C = N                     # embed dim (must equal num_token, see note above)
BN = B * N                # batch folded onto the row axis
NUM_HEADS = 1
HEAD_DIM = C // NUM_HEADS
SCALE = HEAD_DIM ** -0.5
MLP_RATIO = 4.0
HID = int(C * MLP_RATIO)          # 68
REDUCTION = C // 4                # 4
SE_DIM = HID // REDUCTION         # 17
EPS_LN = 1e-5
EPS_BN = 1e-5
MAXSH = W + 1                     # max |row shift| of any 3x3 tap (= 5)
DELTAS = tuple(dh * W + dw for dh in (-1, 0, 1) for dw in (-1, 0, 1))

# depthwise scratch layout (aligned h1 store, zero halos)
PAD_OFF = 8                       # sublane-aligned offset of h1 inside the scratch
PAD_ROWS = 48                     # PAD_OFF + BN + halo, multiple of 8
assert PAD_OFF >= MAXSH and PAD_OFF % 8 == 0
assert PAD_ROWS - 8 <= PAD_OFF + BN and PAD_OFF + BN + MAXSH <= PAD_ROWS

# mask-slab column layout
COL_ATTN = 0                      # lanes [0, BN): block-diagonal attention bias
COL_SPAT = BN                     # lane BN: 1.0 on spatial rows, 0.0 on cls rows
COL_BATCH = BN + 1                # lanes [BN+1, BN+1+B): batch one-hot per row
COL_DW = BN + 1 + B               # lanes [COL_DW, COL_DW+9): per-tap validity masks
MASK_W = 48

# packed weight slab lane offsets (128-aligned so slices stay on vreg tiles)
M17_QKV, M17_W1, M17_WSE2, M17_W = 0, 128, 256, 384
M68_WSE1, M68_W3, M68_W = 0, 128, 256

# const slab rows (f32 biases / folded BN offsets / depthwise tap weights)
ROW_DW0 = 0                       # rows 0..8: 9 depthwise tap weights (BN2 scale folded)
ROW_BQKV = 9
ROW_T1 = 10
ROW_T2 = 11
ROW_BSE1 = 12
ROW_BSE2 = 13
ROW_T3 = 14
CONST_ROWS, CONST_W = 16, 128


# ---------------- fused kernel ----------------
def _layer_kernel(x_ref, mat17_ref, mat68_ref, const_ref, mask_ref, pool_ref,
                  o_ref, pad_ref):
    f32 = jnp.float32
    bf16 = jnp.bfloat16
    x = x_ref[...]                                              # (BN, C) f32

    # ---- x1 = x + Attention(LayerNorm(x)) -----------------------------------
    # gamma/beta + softmax scale are folded into the QKV weights, and Wp (+ bp)
    # is folded into the V block on the host, so attention is just
    # softmax(q k^T + mask) @ v.
    mu = jnp.mean(x, axis=-1, keepdims=True)
    var = jnp.mean((x - mu) ** 2, axis=-1, keepdims=True)
    y = (x - mu) * lax.rsqrt(var + EPS_LN)

    qkv = jnp.dot(y.astype(bf16), mat17_ref[:, M17_QKV:M17_QKV + 3 * C],
                  preferred_element_type=f32)                   # (BN, 3C)
    qkv = qkv + const_ref[ROW_BQKV:ROW_BQKV + 1, 0:3 * C]
    q = qkv[:, 0:C]
    k = qkv[:, C:2 * C]
    v = qkv[:, 2 * C:3 * C]

    s = lax.dot_general(q.astype(bf16), k.astype(bf16),
                        (((1,), (1,)), ((), ())),
                        preferred_element_type=f32)             # (BN, BN)
    # Block-diagonal -1e30 mask (finite on purpose: exp(-1e30 - max) underflows
    # cleanly to 0 in f32; -inf would give inf - inf = NaN in the max-subtract).
    s = s + mask_ref[:, COL_ATTN:COL_ATTN + BN]
    s = s - jnp.max(s, axis=-1, keepdims=True)
    p = jnp.exp(s)
    p = p * pl.reciprocal(jnp.sum(p, axis=-1, keepdims=True), approx=True)
    x1 = x + jnp.dot(p.astype(bf16), v.astype(bf16), preferred_element_type=f32)

    # ---- LocalityFeedForward on spatial tokens (cls rows masked at the end) --
    h1 = jnp.dot(x1.astype(bf16), mat17_ref[:, M17_W1:M17_W1 + HID],
                 preferred_element_type=f32)                    # 1x1 conv
    h1 = h1 + const_ref[ROW_T1:ROW_T1 + 1, 0:HID]               # folded BN1
    h1 = h1 * (jnp.clip(h1 + 3.0, 0.0, 6.0) * (1.0 / 6.0))      # h_swish

    # depthwise 3x3: h1 stored once at an 8-aligned sublane offset, halo rows
    # zeroed with aligned stores (bottom halo written before h1 so only the
    # trailing rows stay zero), then 9 shifted reads + VPU FMAs against a
    # (9,HID) weight table and per-row 0/1 masks.  All out-of-image,
    # cross-image and cls taps are masked, so halo contents never leak through.
    pad_ref[pl.ds(0, PAD_OFF), :] = jnp.zeros((PAD_OFF, HID), f32)
    pad_ref[pl.ds(PAD_ROWS - 8, 8), :] = jnp.zeros((8, HID), f32)
    pad_ref[pl.ds(PAD_OFF, BN), :] = h1
    acc = jnp.zeros_like(h1)
    for tap in range(9):
        shifted = pad_ref[pl.ds(PAD_OFF + DELTAS[tap], BN), :]          # (BN, HID)
        w_tap = const_ref[ROW_DW0 + tap:ROW_DW0 + tap + 1, 0:HID]       # (1, HID)
        m_tap = mask_ref[:, COL_DW + tap:COL_DW + tap + 1]              # (BN, 1)
        acc = acc + shifted * w_tap * m_tap
    h2 = acc + const_ref[ROW_T2:ROW_T2 + 1, 0:HID]              # folded BN2 offset
    h2 = h2 * (jnp.clip(h2 + 3.0, 0.0, 6.0) * (1.0 / 6.0))      # h_swish

    # SE: per-image average pool (tiny matmul), two FCs, then a VPU one-hot
    # broadcast of the (B, HID) scales back onto the rows (no MXU expand).
    se = jnp.dot(pool_ref[...], h2.astype(bf16), preferred_element_type=f32)   # (B, HID)
    se = jnp.dot(se.astype(bf16), mat68_ref[:, M68_WSE1:M68_WSE1 + SE_DIM],
                 preferred_element_type=f32) + const_ref[ROW_BSE1:ROW_BSE1 + 1, 0:SE_DIM]
    se = jnp.maximum(se, 0.0)
    se = jnp.dot(se.astype(bf16), mat17_ref[:, M17_WSE2:M17_WSE2 + HID],
                 preferred_element_type=f32) + const_ref[ROW_BSE2:ROW_BSE2 + 1, 0:HID]
    se = jnp.clip(se + 3.0, 0.0, 6.0) * (1.0 / 6.0)             # h_sigmoid, (B, HID)
    se_rows = jnp.zeros_like(h2)
    for b in range(B):
        se_rows = se_rows + mask_ref[:, COL_BATCH + b:COL_BATCH + b + 1] * se[b:b + 1, :]
    h2 = h2 * se_rows

    out = jnp.dot(h2.astype(bf16), mat68_ref[:, M68_W3:M68_W3 + C],
                  preferred_element_type=f32)                   # 1x1 conv
    out = out + const_ref[ROW_T3:ROW_T3 + 1, 0:C]               # folded BN3
    # cls rows pass through unchanged (spatial mask is 0 there)
    o_ref[...] = x1 + mask_ref[:, COL_SPAT:COL_SPAT + 1] * out


def transformer_layer_call(x, params):
    mat17, mat68, const_slab, mask_slab, pool_mat = params
    xf = x.reshape(BN, C)
    flops = 2 * (BN * C * 3 * C + BN * C * BN + BN * BN * C + BN * C * HID
                 + 9 * BN * HID + B * BN * HID + B * HID * SE_DIM
                 + B * SE_DIM * HID + BN * HID * C)
    bytes_acc = 4 * (2 * BN * C + CONST_ROWS * CONST_W + BN * MASK_W) \
        + 2 * (C * M17_W + HID * M68_W + B * BN)
    of = pl.pallas_call(
        _layer_kernel,
        out_shape=jax.ShapeDtypeStruct((BN, C), jnp.float32),
        scratch_shapes=[pltpu.VMEM((PAD_ROWS, HID), jnp.float32)],
        input_output_aliases={0: 0},
        cost_estimate=pl.CostEstimate(flops=flops,
                                      transcendentals=BN * BN + 2 * BN,
                                      bytes_accessed=bytes_acc),
    )(xf, mat17, mat68, const_slab, mask_slab, pool_mat)
    return of.reshape(B, N, C)


# ---------------- main ----------------
if __name__ == "__main__":
    key = jax.random.PRNGKey(0)
    ks = jax.random.split(key, 26)

    def nrm(k, shape, s):
        return s * jax.random.normal(k, shape, jnp.float32)

    x = jax.random.normal(ks[0], (B, N, C), jnp.float32)

    gamma = 1.0 + nrm(ks[1], (1, C), 0.1)
    beta = nrm(ks[2], (1, C), 0.1)
    wqkv = nrm(ks[3], (C, 3 * C), 1.0 / math.sqrt(C))      # qkv_bias=False
    wp = nrm(ks[4], (C, C), 1.0 / math.sqrt(C))
    bp = nrm(ks[5], (1, C), 0.05)

    w1 = nrm(ks[6], (C, HID), 1.0 / math.sqrt(C))
    wdw = nrm(ks[7], (9, HID), 0.3)
    wse1 = nrm(ks[8], (HID, SE_DIM), 1.0 / math.sqrt(HID))
    bse1 = nrm(ks[9], (1, SE_DIM), 0.05)
    wse2 = nrm(ks[10], (SE_DIM, HID), 1.0 / math.sqrt(SE_DIM))
    bse2 = nrm(ks[11], (1, HID), 0.05)
    w3 = nrm(ks[12], (HID, C), 1.0 / math.sqrt(HID))

    def bn_fold(kg, kb, km, kv, dim):
        g = 1.0 + 0.1 * jax.random.normal(kg, (dim,), jnp.float32)
        b = 0.1 * jax.random.normal(kb, (dim,), jnp.float32)
        m = 0.1 * jax.random.normal(km, (dim,), jnp.float32)
        v = jax.random.uniform(kv, (dim,), jnp.float32, 0.5, 1.5)
        s = g / jnp.sqrt(v + EPS_BN)
        t = b - m * s
        return s.reshape(1, dim), t.reshape(1, dim)

    s1, t1 = bn_fold(ks[13], ks[14], ks[15], ks[16], HID)
    s2, t2 = bn_fold(ks[17], ks[18], ks[19], ks[20], HID)
    s3, t3 = bn_fold(ks[21], ks[22], ks[23], ks[24], C)

    # ---- host-side folding ---------------------------------------------------
    # LN gamma/beta + softmax scale into QKV; Wp (+bp) into the V block (softmax
    # rows sum to 1, so the folded V bias passes through attn @ .); BN scales
    # into the adjacent 1x1 / depthwise conv weights (inference-mode BN).
    g_col = gamma.reshape(C, 1)
    wq, wk, wv = wqkv[:, :C], wqkv[:, C:2 * C], wqkv[:, 2 * C:]
    wq_f = SCALE * (g_col * wq)
    wk_f = g_col * wk
    wv_f = (g_col * wv) @ wp
    bq_f = SCALE * (beta @ wq)
    bk_f = beta @ wk
    bv_f = (beta @ wv) @ wp + bp
    wqkv_f = jnp.concatenate([wq_f, wk_f, wv_f], axis=1)       # (C, 3C)
    bqkv_f = jnp.concatenate([bq_f, bk_f, bv_f], axis=1)       # (1, 3C)
    w1_f = w1 * s1
    w3_f = w3 * s3
    wdw_f = wdw * s2                                           # (9, HID)

    # ---- packed parameter slabs (few lane-dense DMAs instead of ~20 tiny ones)
    mat17 = np.zeros((C, M17_W), np.float32)                   # bf16 matmul weights, 17 rows
    mat17[:, M17_QKV:M17_QKV + 3 * C] = np.asarray(wqkv_f)
    mat17[:, M17_W1:M17_W1 + HID] = np.asarray(w1_f)
    mat17[:, M17_WSE2:M17_WSE2 + HID] = np.asarray(wse2)
    mat68 = np.zeros((HID, M68_W), np.float32)                 # bf16 matmul weights, 68 rows
    mat68[:, M68_WSE1:M68_WSE1 + SE_DIM] = np.asarray(wse1)
    mat68[:, M68_W3:M68_W3 + C] = np.asarray(w3_f)

    const_slab = np.zeros((CONST_ROWS, CONST_W), np.float32)   # f32 biases + dw weights
    const_slab[ROW_DW0:ROW_DW0 + 9, 0:HID] = np.asarray(wdw_f)
    const_slab[ROW_BQKV, 0:3 * C] = np.asarray(bqkv_f)[0]
    const_slab[ROW_T1, 0:HID] = np.asarray(t1)[0]
    const_slab[ROW_T2, 0:HID] = np.asarray(t2)[0]
    const_slab[ROW_BSE1, 0:SE_DIM] = np.asarray(bse1)[0]
    const_slab[ROW_BSE2, 0:HID] = np.asarray(bse2)[0]
    const_slab[ROW_T3, 0:C] = np.asarray(t3)[0]

    # structural masks: block-diag attention bias, spatial/cls row mask, batch
    # one-hot (SE broadcast), and the 9 depthwise tap validity masks.
    mask_slab = np.zeros((BN, MASK_W), np.float32)
    pool_np = np.zeros((B, BN), np.float32)
    for i in range(BN):
        for j in range(BN):
            if i // N != j // N:
                mask_slab[i, COL_ATTN + j] = -1e30
    for r in range(BN):
        b = r // N
        t = r % N
        mask_slab[r, COL_BATCH + b] = 1.0
        if t == 0:
            continue                                   # cls token row
        mask_slab[r, COL_SPAT] = 1.0
        pool_np[b, r] = 1.0 / P
        pp = t - 1
        hh, ww = pp // W, pp % W
        for dh in (-1, 0, 1):
            for dw_ in (-1, 0, 1):
                tap = (dh + 1) * 3 + (dw_ + 1)
                if 0 <= hh + dh < H and 0 <= ww + dw_ < W:
                    mask_slab[r, COL_DW + tap] = 1.0

    params = (jnp.asarray(mat17, jnp.bfloat16),
              jnp.asarray(mat68, jnp.bfloat16),
              jnp.asarray(const_slab, jnp.float32),
              jnp.asarray(mask_slab, jnp.float32),
              jnp.asarray(pool_np, jnp.bfloat16))

    fwd = jax.jit(transformer_layer_call)

    # ---- pure-JAX f32 reference with the original (unfolded) parameters ----
    def ref_forward(x_in):
        mu = x_in.mean(-1, keepdims=True)
        var = ((x_in - mu) ** 2).mean(-1, keepdims=True)
        y = (x_in - mu) / jnp.sqrt(var + EPS_LN) * gamma.reshape(C) + beta.reshape(C)
        qkv = y @ wqkv
        qkv = qkv.reshape(B, N, 3, NUM_HEADS, HEAD_DIM).transpose(2, 0, 3, 1, 4)
        q, k, v = qkv[0], qkv[1], qkv[2]
        att = jnp.einsum('bhqd,bhkd->bhqk', q, k) * SCALE
        att = jax.nn.softmax(att, axis=-1)
        o = jnp.einsum('bhqk,bhkd->bhqd', att, v).transpose(0, 2, 1, 3).reshape(B, N, C)
        o = o @ wp + bp.reshape(C)
        x1 = x_in + o
        cls_tok = x1[:, :1]
        xs = x1[:, 1:]
        h1 = xs @ w1
        h1 = h1 * s1 + t1
        h1 = h1 * (jnp.clip(h1 + 3.0, 0.0, 6.0) / 6.0)
        img = h1.reshape(B, H, W, HID)
        imgp = jnp.pad(img, ((0, 0), (1, 1), (1, 1), (0, 0)))
        acc = jnp.zeros_like(img)
        for i in range(3):
            for j in range(3):
                acc = acc + imgp[:, i:i + H, j:j + W, :] * wdw[i * 3 + j]
        h2 = acc.reshape(B, P, HID)
        h2 = h2 * s2 + t2
        h2 = h2 * (jnp.clip(h2 + 3.0, 0.0, 6.0) / 6.0)
        se = h2.mean(axis=1)
        se = jnp.maximum(se @ wse1 + bse1.reshape(SE_DIM), 0.0)
        se = se @ wse2 + bse2.reshape(HID)
        se = jnp.clip(se + 3.0, 0.0, 6.0) / 6.0
        h2 = h2 * se[:, None, :]
        out = h2 @ w3
        out = out * s3 + t3
        xs_out = xs + out
        return jnp.concatenate([cls_tok, xs_out], axis=1)

    out_kernel = jax.block_until_ready(fwd(x, params))
    out_ref = jax.block_until_ready(ref_forward(x))
    err = float(jnp.max(jnp.abs(out_kernel - out_ref)))
    assert out_kernel.shape == (B, N, C)
    # bf16 MXU operands (f32 accumulation) -> tolerance relaxed vs the f32 reference.
    assert err < 5e-2, f"max abs err {err}"
    print("KERNEL_OK")
</pallas_src>

<mosaic_0001>
module attributes {stable_mosaic.version = 11 : i64} {
  func.func @_layer_kernel(%arg0: memref<34x17xf32, #tpu.memory_space<vmem>>, %arg1: memref<17x384xbf16, #tpu.memory_space<vmem>>, %arg2: memref<68x256xbf16, #tpu.memory_space<vmem>>, %arg3: memref<16x128xf32, #tpu.memory_space<vmem>>, %arg4: memref<34x48xf32, #tpu.memory_space<vmem>>, %arg5: memref<2x34xbf16, #tpu.memory_space<vmem>>, %arg6: memref<34x17xf32, #tpu.memory_space<vmem>>, %arg7: memref<48x68xf32, #tpu.memory_space<vmem>>) attributes {dimension_semantics = [], scalar_prefetch = 0 : i64, scratch_operands = 1 : i64, tpu.core_type = #tpu.core_type<tc>} {
    %c0 = arith.constant 0 : index
    %c0_0 = arith.constant 0 : index
    %0 = vector.load %arg0[%c0, %c0_0] : memref<34x17xf32, #tpu.memory_space<vmem>>, vector<34x17xf32>
    %cst = arith.constant dense<0.000000e+00> : vector<34xf32>
    %1 = vector.multi_reduction <add>, %0, %cst [1] : vector<34x17xf32> to vector<34xf32>
    %2 = vector.shape_cast %1 : vector<34xf32> to vector<34x1xf32>
    %cst_1 = arith.constant 1.700000e+01 : f32
    %3 = vector.broadcast %cst_1 : f32 to vector<34x1xf32>
    %4 = arith.divf %2, %3 : vector<34x1xf32>
    %5 = vector.broadcast %4 : vector<34x1xf32> to vector<34x17xf32>
    %6 = arith.subf %0, %5 : vector<34x17xf32>
    %7 = arith.mulf %6, %6 : vector<34x17xf32>
    %cst_2 = arith.constant dense<0.000000e+00> : vector<34xf32>
    %8 = vector.multi_reduction <add>, %7, %cst_2 [1] : vector<34x17xf32> to vector<34xf32>
    %9 = vector.shape_cast %8 : vector<34xf32> to vector<34x1xf32>
    %cst_3 = arith.constant 1.700000e+01 : f32
    %10 = vector.broadcast %cst_3 : f32 to vector<34x1xf32>
    %11 = arith.divf %9, %10 : vector<34x1xf32>
    %12 = vector.broadcast %4 : vector<34x1xf32> to vector<34x17xf32>
    %13 = arith.subf %0, %12 : vector<34x17xf32>
    %cst_4 = arith.constant 9.99999974E-6 : f32
    %14 = vector.broadcast %cst_4 : f32 to vector<34x1xf32>
    %15 = arith.addf %11, %14 : vector<34x1xf32>
    %16 = math.rsqrt %15 : vector<34x1xf32>
    %17 = vector.broadcast %16 : vector<34x1xf32> to vector<34x17xf32>
    %18 = arith.mulf %13, %17 : vector<34x17xf32>
    %19 = arith.truncf %18 : vector<34x17xf32> to vector<34x17xbf16>
    %c0_5 = arith.constant 0 : index
    %c0_6 = arith.constant 0 : index
    %20 = vector.load %arg1[%c0_5, %c0_6] : memref<17x384xbf16, #tpu.memory_space<vmem>>, vector<17x51xbf16>
    %cst_7 = arith.constant dense<0.000000e+00> : vector<34x51xf32>
    %21 = tpu.matmul %19, %20, %cst_7 {dimension_numbers = #tpu.dot_dimension_numbers<[1], [0], [0], [1], [0, 0, 1, 1], [], []>} : vector<34x17xbf16>, vector<17x51xbf16>, vector<34x51xf32> -> vector<34x51xf32>
    %c9 = arith.constant 9 : index
    %c0_8 = arith.constant 0 : index
    %22 = vector.load %arg3[%c9, %c0_8] : memref<16x128xf32, #tpu.memory_space<vmem>>, vector<1x51xf32>
    %23 = vector.broadcast %22 : vector<1x51xf32> to vector<34x51xf32>
    %24 = arith.addf %21, %23 : vector<34x51xf32>
    %25 = vector.extract_strided_slice %24 {offsets = [0, 0], sizes = [34, 17], strides = [1, 1]} : vector<34x51xf32> to vector<34x17xf32>
    %26 = vector.extract_strided_slice %24 {offsets = [0, 17], sizes = [34, 17], strides = [1, 1]} : vector<34x51xf32> to vector<34x17xf32>
    %27 = vector.extract_strided_slice %24 {offsets = [0, 34], sizes = [34, 17], strides = [1, 1]} : vector<34x51xf32> to vector<34x17xf32>
    %28 = arith.truncf %25 : vector<34x17xf32> to vector<34x17xbf16>
    %29 = arith.truncf %26 : vector<34x17xf32> to vector<34x17xbf16>
    %cst_9 = arith.constant dense<0.000000e+00> : vector<34x34xf32>
    %30 = tpu.matmul %28, %29, %cst_9 {dimension_numbers = #tpu.dot_dimension_numbers<[1], [1], [0], [0], [0, 0, 1, 0], [], []>} : vector<34x17xbf16>, vector<34x17xbf16>, vector<34x34xf32> -> vector<34x34xf32>
    %c0_10 = arith.constant 0 : index
    %c0_11 = arith.constant 0 : index
    %31 = vector.load %arg4[%c0_10, %c0_11] : memref<34x48xf32, #tpu.memory_space<vmem>>, vector<34x34xf32>
    %32 = arith.addf %30, %31 : vector<34x34xf32>
    %cst_12 = arith.constant dense<0xFF800000> : vector<34xf32>
    %33 = vector.multi_reduction <maximumf>, %32, %cst_12 [1] : vector<34x34xf32> to vector<34xf32>
    %34 = vector.shape_cast %33 : vector<34xf32> to vector<34x1xf32>
    %35 = vector.broadcast %34 : vector<34x1xf32> to vector<34x34xf32>
    %36 = arith.subf %32, %35 : vector<34x34xf32>
    %37 = math.exp %36 : vector<34x34xf32>
    %cst_13 = arith.constant dense<0.000000e+00> : vector<34xf32>
    %38 = vector.multi_reduction <add>, %37, %cst_13 [1] : vector<34x34xf32> to vector<34xf32>
    %39 = vector.shape_cast %38 : vector<34xf32> to vector<34x1xf32>
    %40 = tpu.reciprocal %39 {approx = true} : vector<34x1xf32> -> vector<34x1xf32>
    %41 = vector.broadcast %40 : vector<34x1xf32> to vector<34x34xf32>
    %42 = arith.mulf %37, %41 : vector<34x34xf32>
    %43 = arith.truncf %42 : vector<34x34xf32> to vector<34x34xbf16>
    %44 = arith.truncf %27 : vector<34x17xf32> to vector<34x17xbf16>
    %cst_14 = arith.constant dense<0.000000e+00> : vector<34x17xf32>
    %45 = tpu.matmul %43, %44, %cst_14 {dimension_numbers = #tpu.dot_dimension_numbers<[1], [0], [0], [1], [0, 0, 1, 1], [], []>} : vector<34x34xbf16>, vector<34x17xbf16>, vector<34x17xf32> -> vector<34x17xf32>
    %46 = arith.addf %0, %45 : vector<34x17xf32>
    %47 = arith.truncf %46 : vector<34x17xf32> to vector<34x17xbf16>
    %c0_15 = arith.constant 0 : index
    %c128 = arith.constant 128 : index
    %48 = vector.load %arg1[%c0_15, %c128] : memref<17x384xbf16, #tpu.memory_space<vmem>>, vector<17x68xbf16>
    %cst_16 = arith.constant dense<0.000000e+00> : vector<34x68xf32>
    %49 = tpu.matmul %47, %48, %cst_16 {dimension_numbers = #tpu.dot_dimension_numbers<[1], [0], [0], [1], [0, 0, 1, 1], [], []>} : vector<34x17xbf16>, vector<17x68xbf16>, vector<34x68xf32> -> vector<34x68xf32>
    %c10 = arith.constant 10 : index
    %c0_17 = arith.constant 0 : index
    %50 = vector.load %arg3[%c10, %c0_17] : memref<16x128xf32, #tpu.memory_space<vmem>>, vector<1x68xf32>
    %51 = vector.broadcast %50 : vector<1x68xf32> to vector<34x68xf32>
    %52 = arith.addf %49, %51 : vector<34x68xf32>
    %cst_18 = arith.constant 3.000000e+00 : f32
    %53 = vector.broadcast %cst_18 : f32 to vector<34x68xf32>
    %54 = arith.addf %52, %53 : vector<34x68xf32>
    %cst_19 = arith.constant 0.000000e+00 : f32
    %cst_20 = arith.constant 6.000000e+00 : f32
    %55 = vector.broadcast %cst_19 : f32 to vector<34x68xf32>
    %56 = arith.maximumf %55, %54 : vector<34x68xf32>
    %57 = vector.broadcast %cst_20 : f32 to vector<34x68xf32>
    %58 = arith.minimumf %57, %56 : vector<34x68xf32>
    %cst_21 = arith.constant 0.166666672 : f32
    %59 = vector.broadcast %cst_21 : f32 to vector<34x68xf32>
    %60 = arith.mulf %58, %59 : vector<34x68xf32>
    %61 = arith.mulf %52, %60 : vector<34x68xf32>
    %cst_22 = arith.constant 0.000000e+00 : f32
    %62 = vector.broadcast %cst_22 : f32 to vector<8x68xf32>
    %c0_23 = arith.constant 0 : index
    %c0_24 = arith.constant 0 : index
    %63 = vector.load %arg7[%c0_23, %c0_24] : memref<48x68xf32, #tpu.memory_space<vmem>>, vector<8x68xf32>
    tpu.vector_store %arg7[%c0_23, %c0_24], %62 {strides = array<i32>} : memref<48x68xf32, #tpu.memory_space<vmem>>, vector<8x68xf32>,
    %cst_25 = arith.constant 0.000000e+00 : f32
    %64 = vector.broadcast %cst_25 : f32 to vector<8x68xf32>
    %c40 = arith.constant 40 : index
    %c0_26 = arith.constant 0 : index
    %65 = vector.load %arg7[%c40, %c0_26] : memref<48x68xf32, #tpu.memory_space<vmem>>, vector<8x68xf32>
    tpu.vector_store %arg7[%c40, %c0_26], %64 {strides = array<i32>} : memref<48x68xf32, #tpu.memory_space<vmem>>, vector<8x68xf32>,
    %c8 = arith.constant 8 : index
    %c0_27 = arith.constant 0 : index
    %66 = vector.load %arg7[%c8, %c0_27] : memref<48x68xf32, #tpu.memory_space<vmem>>, vector<34x68xf32>
    tpu.vector_store %arg7[%c8, %c0_27], %61 {strides = array<i32>} : memref<48x68xf32, #tpu.memory_space<vmem>>, vector<34x68xf32>,
    %cst_28 = arith.constant 0.000000e+00 : f32
    %67 = vector.broadcast %cst_28 : f32 to vector<34x68xf32>
    %c3 = arith.constant 3 : index
    %c0_29 = arith.constant 0 : index
    %68 = vector.load %arg7[%c3, %c0_29] : memref<48x68xf32, #tpu.memory_space<vmem>>, vector<34x68xf32>
    %c0_30 = arith.constant 0 : index
    %c0_31 = arith.constant 0 : index
    %69 = vector.load %arg3[%c0_30, %c0_31] : memref<16x128xf32, #tpu.memory_space<vmem>>, vector<1x68xf32>
    %c0_32 = arith.constant 0 : index
    %c37 = arith.constant 37 : index
    %70 = vector.load %arg4[%c0_32, %c37] : memref<34x48xf32, #tpu.memory_space<vmem>>, vector<34x1xf32>
    %71 = vector.broadcast %69 : vector<1x68xf32> to vector<34x68xf32>
    %72 = arith.mulf %68, %71 : vector<34x68xf32>
    %73 = vector.broadcast %70 : vector<34x1xf32> to vector<34x68xf32>
    %74 = arith.mulf %72, %73 : vector<34x68xf32>
    %75 = arith.addf %67, %74 : vector<34x68xf32>
    %c4 = arith.constant 4 : index
    %c0_33 = arith.constant 0 : index
    %76 = vector.load %arg7[%c4, %c0_33] : memref<48x68xf32, #tpu.memory_space<vmem>>, vector<34x68xf32>
    %c1 = arith.constant 1 : index
    %c0_34 = arith.constant 0 : index
    %77 = vector.load %arg3[%c1, %c0_34] : memref<16x128xf32, #tpu.memory_space<vmem>>, vector<1x68xf32>
    %c0_35 = arith.constant 0 : index
    %c38 = arith.constant 38 : index
    %78 = vector.load %arg4[%c0_35, %c38] : memref<34x48xf32, #tpu.memory_space<vmem>>, vector<34x1xf32>
    %79 = vector.broadcast %77 : vector<1x68xf32> to vector<34x68xf32>
    %80 = arith.mulf %76, %79 : vector<34x68xf32>
    %81 = vector.broadcast %78 : vector<34x1xf32> to vector<34x68xf32>
    %82 = arith.mulf %80, %81 : vector<34x68xf32>
    %83 = arith.addf %75, %82 : vector<34x68xf32>
    %c5 = arith.constant 5 : index
    %c0_36 = arith.constant 0 : index
    %84 = vector.load %arg7[%c5, %c0_36] : memref<48x68xf32, #tpu.memory_space<vmem>>, vector<34x68xf32>
    %c2 = arith.constant 2 : index
    %c0_37 = arith.constant 0 : index
    %85 = vector.load %arg3[%c2, %c0_37] : memref<16x128xf32, #tpu.memory_space<vmem>>, vector<1x68xf32>
    %c0_38 = arith.constant 0 : index
    %c39 = arith.constant 39 : index
    %86 = vector.load %arg4[%c0_38, %c39] : memref<34x48xf32, #tpu.memory_space<vmem>>, vector<34x1xf32>
    %87 = vector.broadcast %85 : vector<1x68xf32> to vector<34x68xf32>
    %88 = arith.mulf %84, %87 : vector<34x68xf32>
    %89 = vector.broadcast %86 : vector<34x1xf32> to vector<34x68xf32>
    %90 = arith.mulf %88, %89 : vector<34x68xf32>
    %91 = arith.addf %83, %90 : vector<34x68xf32>
    %c7 = arith.constant 7 : index
    %c0_39 = arith.constant 0 : index
    %92 = vector.load %arg7[%c7, %c0_39] : memref<48x68xf32, #tpu.memory_space<vmem>>, vector<34x68xf32>
    %c3_40 = arith.constant 3 : index
    %c0_41 = arith.constant 0 : index
    %93 = vector.load %arg3[%c3_40, %c0_41] : memref<16x128xf32, #tpu.memory_space<vmem>>, vector<1x68xf32>
    %c0_42 = arith.constant 0 : index
    %c40_43 = arith.constant 40 : index
    %94 = vector.load %arg4[%c0_42, %c40_43] : memref<34x48xf32, #tpu.memory_space<vmem>>, vector<34x1xf32>
    %95 = vector.broadcast %93 : vector<1x68xf32> to vector<34x68xf32>
    %96 = arith.mulf %92, %95 : vector<34x68xf32>
    %97 = vector.broadcast %94 : vector<34x1xf32> to vector<34x68xf32>
    %98 = arith.mulf %96, %97 : vector<34x68xf32>
    %99 = arith.addf %91, %98 : vector<34x68xf32>
    %c8_44 = arith.constant 8 : index
    %c0_45 = arith.constant 0 : index
    %100 = vector.load %arg7[%c8_44, %c0_45] : memref<48x68xf32, #tpu.memory_space<vmem>>, vector<34x68xf32>
    %c4_46 = arith.constant 4 : index
    %c0_47 = arith.constant 0 : index
    %101 = vector.load %arg3[%c4_46, %c0_47] : memref<16x128xf32, #tpu.memory_space<vmem>>, vector<1x68xf32>
    %c0_48 = arith.constant 0 : index
    %c41 = arith.constant 41 : index
    %102 = vector.load %arg4[%c0_48, %c41] : memref<34x48xf32, #tpu.memory_space<vmem>>, vector<34x1xf32>
    %103 = vector.broadcast %101 : vector<1x68xf32> to vector<34x68xf32>
    %104 = arith.mulf %100, %103 : vector<34x68xf32>
    %105 = vector.broadcast %102 : vector<34x1xf32> to vector<34x68xf32>
    %106 = arith.mulf %104, %105 : vector<34x68xf32>
    %107 = arith.addf %99, %106 : vector<34x68xf32>
    %c9_49 = arith.constant 9 : index
    %c0_50 = arith.constant 0 : index
    %108 = vector.load %arg7[%c9_49, %c0_50] : memref<48x68xf32, #tpu.memory_space<vmem>>, vector<34x68xf32>
    %c5_51 = arith.constant 5 : index
    %c0_52 = arith.constant 0 : index
    %109 = vector.load %arg3[%c5_51, %c0_52] : memref<16x128xf32, #tpu.memory_space<vmem>>, vector<1x68xf32>
    %c0_53 = arith.constant 0 : index
    %c42 = arith.constant 42 : index
    %110 = vector.load %arg4[%c0_53, %c42] : memref<34x48xf32, #tpu.memory_space<vmem>>, vector<34x1xf32>
    %111 = vector.broadcast %109 : vector<1x68xf32> to vector<34x68xf32>
    %112 = arith.mulf %108, %111 : vector<34x68xf32>
    %113 = vector.broadcast %110 : vector<34x1xf32> to vector<34x68xf32>
    %114 = arith.mulf %112, %113 : vector<34x68xf32>
    %115 = arith.addf %107, %114 : vector<34x68xf32>
    %c11 = arith.constant 11 : index
    %c0_54 = arith.constant 0 : index
    %116 = vector.load %arg7[%c11, %c0_54] : memref<48x68xf32, #tpu.memory_space<vmem>>, vector<34x68xf32>
    %c6 = arith.constant 6 : index
    %c0_55 = arith.constant 0 : index
    %117 = vector.load %arg3[%c6, %c0_55] : memref<16x128xf32, #tpu.memory_space<vmem>>, vector<1x68xf32>
    %c0_56 = arith.constant 0 : index
    %c43 = arith.constant 43 : index
    %118 = vector.load %arg4[%c0_56, %c43] : memref<34x48xf32, #tpu.memory_space<vmem>>, vector<34x1xf32>
    %119 = vector.broadcast %117 : vector<1x68xf32> to vector<34x68xf32>
    %120 = arith.mulf %116, %119 : vector<34x68xf32>
    %121 = vector.broadcast %118 : vector<34x1xf32> to vector<34x68xf32>
    %122 = arith.mulf %120, %121 : vector<34x68xf32>
    %123 = arith.addf %115, %122 : vector<34x68xf32>
    %c12 = arith.constant 12 : index
    %c0_57 = arith.constant 0 : index
    %124 = vector.load %arg7[%c12, %c0_57] : memref<48x68xf32, #tpu.memory_space<vmem>>, vector<34x68xf32>
    %c7_58 = arith.constant 7 : index
    %c0_59 = arith.constant 0 : index
    %125 = vector.load %arg3[%c7_58, %c0_59] : memref<16x128xf32, #tpu.memory_space<vmem>>, vector<1x68xf32>
    %c0_60 = arith.constant 0 : index
    %c44 = arith.constant 44 : index
    %126 = vector.load %arg4[%c0_60, %c44] : memref<34x48xf32, #tpu.memory_space<vmem>>, vector<34x1xf32>
    %127 = vector.broadcast %125 : vector<1x68xf32> to vector<34x68xf32>
    %128 = arith.mulf %124, %127 : vector<34x68xf32>
    %129 = vector.broadcast %126 : vector<34x1xf32> to vector<34x68xf32>
    %130 = arith.mulf %128, %129 : vector<34x68xf32>
    %131 = arith.addf %123, %130 : vector<34x68xf32>
    %c13 = arith.constant 13 : index
    %c0_61 = arith.constant 0 : index
    %132 = vector.load %arg7[%c13, %c0_61] : memref<48x68xf32, #tpu.memory_space<vmem>>, vector<34x68xf32>
    %c8_62 = arith.constant 8 : index
    %c0_63 = arith.constant 0 : index
    %133 = vector.load %arg3[%c8_62, %c0_63] : memref<16x128xf32, #tpu.memory_space<vmem>>, vector<1x68xf32>
    %c0_64 = arith.constant 0 : index
    %c45 = arith.constant 45 : index
    %134 = vector.load %arg4[%c0_64, %c45] : memref<34x48xf32, #tpu.memory_space<vmem>>, vector<34x1xf32>
    %135 = vector.broadcast %133 : vector<1x68xf32> to vector<34x68xf32>
    %136 = arith.mulf %132, %135 : vector<34x68xf32>
    %137 = vector.broadcast %134 : vector<34x1xf32> to vector<34x68xf32>
    %138 = arith.mulf %136, %137 : vector<34x68xf32>
    %139 = arith.addf %131, %138 : vector<34x68xf32>
    %c11_65 = arith.constant 11 : index
    %c0_66 = arith.constant 0 : index
    %140 = vector.load %arg3[%c11_65, %c0_66] : memref<16x128xf32, #tpu.memory_space<vmem>>, vector<1x68xf32>
    %141 = vector.broadcast %140 : vector<1x68xf32> to vector<34x68xf32>
    %142 = arith.addf %139, %141 : vector<34x68xf32>
    %cst_67 = arith.constant 3.000000e+00 : f32
    %143 = vector.broadcast %cst_67 : f32 to vector<34x68xf32>
    %144 = arith.addf %142, %143 : vector<34x68xf32>
    %cst_68 = arith.constant 0.000000e+00 : f32
    %cst_69 = arith.constant 6.000000e+00 : f32
    %145 = vector.broadcast %cst_68 : f32 to vector<34x68xf32>
    %146 = arith.maximumf %145, %144 : vector<34x68xf32>
    %147 = vector.broadcast %cst_69 : f32 to vector<34x68xf32>
    %148 = arith.minimumf %147, %146 : vector<34x68xf32>
    %cst_70 = arith.constant 0.166666672 : f32
    %149 = vector.broadcast %cst_70 : f32 to vector<34x68xf32>
    %150 = arith.mulf %148, %149 : vector<34x68xf32>
    %151 = arith.mulf %142, %150 : vector<34x68xf32>
    %c0_71 = arith.constant 0 : index
    %c0_72 = arith.constant 0 : index
    %152 = vector.load %arg5[%c0_71, %c0_72] : memref<2x34xbf16, #tpu.memory_space<vmem>>, vector<2x34xbf16>
    %153 = arith.truncf %151 : vector<34x68xf32> to vector<34x68xbf16>
    %cst_73 = arith.constant dense<0.000000e+00> : vector<2x68xf32>
    %154 = tpu.matmul %152, %153, %cst_73 {dimension_numbers = #tpu.dot_dimension_numbers<[1], [0], [0], [1], [0, 0, 1, 1], [], []>} : vector<2x34xbf16>, vector<34x68xbf16>, vector<2x68xf32> -> vector<2x68xf32>
    %155 = arith.truncf %154 : vector<2x68xf32> to vector<2x68xbf16>
    %c0_74 = arith.constant 0 : index
    %c0_75 = arith.constant 0 : index
    %156 = vector.load %arg2[%c0_74, %c0_75] : memref<68x256xbf16, #tpu.memory_space<vmem>>, vector<68x17xbf16>
    %cst_76 = arith.constant dense<0.000000e+00> : vector<2x17xf32>
    %157 = tpu.matmul %155, %156, %cst_76 {dimension_numbers = #tpu.dot_dimension_numbers<[1], [0], [0], [1], [0, 0, 1, 1], [], []>} : vector<2x68xbf16>, vector<68x17xbf16>, vector<2x17xf32> -> vector<2x17xf32>
    %c12_77 = arith.constant 12 : index
    %c0_78 = arith.constant 0 : index
    %158 = vector.load %arg3[%c12_77, %c0_78] : memref<16x128xf32, #tpu.memory_space<vmem>>, vector<1x17xf32>
    %159 = vector.broadcast %158 : vector<1x17xf32> to vector<2x17xf32>
    %160 = arith.addf %157, %159 : vector<2x17xf32>
    %cst_79 = arith.constant 0.000000e+00 : f32
    %161 = vector.broadcast %cst_79 : f32 to vector<2x17xf32>
    %162 = arith.maximumf %160, %161 : vector<2x17xf32>
    %163 = arith.truncf %162 : vector<2x17xf32> to vector<2x17xbf16>
    %c0_80 = arith.constant 0 : index
    %c256 = arith.constant 256 : index
    %164 = vector.load %arg1[%c0_80, %c256] : memref<17x384xbf16, #tpu.memory_space<vmem>>, vector<17x68xbf16>
    %cst_81 = arith.constant dense<0.000000e+00> : vector<2x68xf32>
    %165 = tpu.matmul %163, %164, %cst_81 {dimension_numbers = #tpu.dot_dimension_numbers<[1], [0], [0], [1], [0, 0, 1, 1], [], []>} : vector<2x17xbf16>, vector<17x68xbf16>, vector<2x68xf32> -> vector<2x68xf32>
    %c13_82 = arith.constant 13 : index
    %c0_83 = arith.constant 0 : index
    %166 = vector.load %arg3[%c13_82, %c0_83] : memref<16x128xf32, #tpu.memory_space<vmem>>, vector<1x68xf32>
    %167 = vector.broadcast %166 : vector<1x68xf32> to vector<2x68xf32>
    %168 = arith.addf %165, %167 : vector<2x68xf32>
    %cst_84 = arith.constant 3.000000e+00 : f32
    %169 = vector.broadcast %cst_84 : f32 to vector<2x68xf32>
    %170 = arith.addf %168, %169 : vector<2x68xf32>
    %cst_85 = arith.constant 0.000000e+00 : f32
    %cst_86 = arith.constant 6.000000e+00 : f32
    %171 = vector.broadcast %cst_85 : f32 to vector<2x68xf32>
    %172 = arith.maximumf %171, %170 : vector<2x68xf32>
    %173 = vector.broadcast %cst_86 : f32 to vector<2x68xf32>
    %174 = arith.minimumf %173, %172 : vector<2x68xf32>
    %cst_87 = arith.constant 0.166666672 : f32
    %175 = vector.broadcast %cst_87 : f32 to vector<2x68xf32>
    %176 = arith.mulf %174, %175 : vector<2x68xf32>
    %cst_88 = arith.constant 0.000000e+00 : f32
    %177 = vector.broadcast %cst_88 : f32 to vector<34x68xf32>
    %c0_89 = arith.constant 0 : index
    %c35 = arith.constant 35 : index
    %178 = vector.load %arg4[%c0_89, %c35] : memref<34x48xf32, #tpu.memory_space<vmem>>, vector<34x1xf32>
    %179 = vector.extract_strided_slice %176 {offsets = [0, 0], sizes = [1, 68], strides = [1, 1]} : vector<2x68xf32> to vector<1x68xf32>
    %180 = vector.broadcast %178 : vector<34x1xf32> to vector<34x68xf32>
    %181 = vector.broadcast %179 : vector<1x68xf32> to vector<34x68xf32>
    %182 = arith.mulf %180, %181 : vector<34x68xf32>
    %183 = arith.addf %177, %182 : vector<34x68xf32>
    %c0_90 = arith.constant 0 : index
    %c36 = arith.constant 36 : index
    %184 = vector.load %arg4[%c0_90, %c36] : memref<34x48xf32, #tpu.memory_space<vmem>>, vector<34x1xf32>
    %185 = vector.extract_strided_slice %176 {offsets = [1, 0], sizes = [1, 68], strides = [1, 1]} : vector<2x68xf32> to vector<1x68xf32>
    %186 = vector.broadcast %184 : vector<34x1xf32> to vector<34x68xf32>
    %187 = vector.broadcast %185 : vector<1x68xf32> to vector<34x68xf32>
    %188 = arith.mulf %186, %187 : vector<34x68xf32>
    %189 = arith.addf %183, %188 : vector<34x68xf32>
    %190 = arith.mulf %151, %189 : vector<34x68xf32>
    %191 = arith.truncf %190 : vector<34x68xf32> to vector<34x68xbf16>
    %c0_91 = arith.constant 0 : index
    %c128_92 = arith.constant 128 : index
    %192 = vector.load %arg2[%c0_91, %c128_92] : memref<68x256xbf16, #tpu.memory_space<vmem>>, vector<68x17xbf16>
    %cst_93 = arith.constant dense<0.000000e+00> : vector<34x17xf32>
    %193 = tpu.matmul %191, %192, %cst_93 {dimension_numbers = #tpu.dot_dimension_numbers<[1], [0], [0], [1], [0, 0, 1, 1], [], []>} : vector<34x68xbf16>, vector<68x17xbf16>, vector<34x17xf32> -> vector<34x17xf32>
    %c14 = arith.constant 14 : index
    %c0_94 = arith.constant 0 : index
    %194 = vector.load %arg3[%c14, %c0_94] : memref<16x128xf32, #tpu.memory_space<vmem>>, vector<1x17xf32>
    %195 = vector.broadcast %194 : vector<1x17xf32> to vector<34x17xf32>
    %196 = arith.addf %193, %195 : vector<34x17xf32>
    %c0_95 = arith.constant 0 : index
    %c34 = arith.constant 34 : index
    %197 = vector.load %arg4[%c0_95, %c34] : memref<34x48xf32, #tpu.memory_space<vmem>>, vector<34x1xf32>
    %198 = vector.broadcast %197 : vector<34x1xf32> to vector<34x17xf32>
    %199 = arith.mulf %198, %196 : vector<34x17xf32>
    %200 = arith.addf %46, %199 : vector<34x17xf32>
    %c0_96 = arith.constant 0 : index
    %c0_97 = arith.constant 0 : index
    %201 = vector.load %arg6[%c0_96, %c0_97] : memref<34x17xf32, #tpu.memory_space<vmem>>, vector<34x17xf32>
    tpu.vector_store %arg6[%c0_96, %c0_97], %200 {strides = array<i32>} : memref<34x17xf32, #tpu.memory_space<vmem>>, vector<34x17xf32>,
    return
  }
}

</mosaic_0001>

<bundles_post_ra>
// kernel: transformer_layer_call.1
= control target key start
LH: loop header
LB: loop body
LE: loop exit
PB: predicated region body
PF: predicated region fallthrough
CT: control target
= control target key end

     0   :  { %vm29_vm0 = vcmask 138240   ;;  %vm42_vm1 = vcmask 132096   ;;  %v1380_v10 = vmov 17.0   ;;  %vm174_vm3 = vcmask 1040384   ;;  %s1382_s14 = smov 111   ;;  %s1383_s25 = smov 94   ;;  %s2106_s0 = inlined_call_operand.vmem [shape: f32[34,17], index: 0, kind: input, shape index: {}, may-alias: {0,6}]   ;;  %s2107_s3 = inlined_call_operand.vmem [shape: f32[16,128], index: 3, kind: input, shape index: {}]   ;;  %s2108_s1 = inlined_call_operand.vmem [shape: bf16[17,384], index: 1, kind: input, shape index: {}]   ;;  %s2109_s4 = inlined_call_operand.vmem [shape: f32[34,48], index: 4, kind: input, shape index: {}]   ;;  %s2110_s2 = inlined_call_operand.vmem [shape: bf16[68,256], index: 2, kind: input, shape index: {}]   ;;  %s2111_s5 = inlined_call_operand.vmem [shape: bf16[2,34], index: 5, kind: input, shape index: {}]   ;;  %s2112_s6 = inlined_call_operand.vmem [shape: f32[34,17], index: 6, kind: output, shape index: {}, may-alias: {0,6}]  }
   0x1   :  { %v1435_v0 = vld [vmem:[%s2106_s0 + $0x10] sm:$0xff]  ;;  %v1440_v1 = vld [vmem:[%s2106_s0] sm:$0xff]  ;;  %v1456_v6 = vld [vmem:[%s2106_s0 + $0x18] sm:$0xff]  ;;  %1343 = vrcp.f32 %v1380_v10  ;;  %v1381_v45 = vmov 0  }
   0x2   :  { %v36_v2 = vsel %vm29_vm0, %v1435_v0, 0.0  ;;  %v30_v3 = vsel %vm29_vm0, %v1440_v1, 0.0  ;;  %v1449_v4 = vld [vmem:[%s2106_s0 + $0x20] sm:$0x3]  ;;  %v1461_v7 = vld [vmem:[%s2106_s0 + $0x8] sm:$0xff]  ;;  %v39_v8 = vsel %vm29_vm0, %v1456_v6, 0.0 }
   0x3   :  { %37 = vadd.xlane.f32.xlu1 %v36_v2  ;;  %31 = vadd.xlane.f32.xlu0 %v30_v3  ;;  %v43_v5 = vsel %vm42_vm1, %v1449_v4, 0.0  ;;  %v33_v9 = vsel %vm29_vm0, %v1461_v7, 0.0  ;;  %v153_v42 = vld [vmem:[%s2108_s1 + $0x18] sm:$0x1]  ;;  %v1508_v46 = vsel %vm174_vm3, 65535, %v1381_v45 }
   0x4   :  { %44 = vadd.xlane.f32.xlu2 %v43_v5  ;;  %v161_v43 = vunpack.c.l.b16 %v153_v42  ;;  %2121 = vst [vmem:[#allocation3_spill] sm:$0xff] %v1508_v46  ;;  %v1180_v48 = vld [vmem:[%s2108_s1] sm:$0xf]  ;;  %v1240_v49 = vld [vmem:[%s2108_s1 + $0x8] sm:$0xf0] }
   0x5   :  { %v1181_v50 = vor.u32 %v1240_v49, %v1180_v48 }
   0x6   :  { %v163_v44 = vpack.c.b16 %v161_v43, %v161_v43 }
   0x7   :  { %v1344_v11 = vpop.eup %1343 }
   0x8   :  { %v47_v12 = vmul.f32 17.0, %v1344_v11  ;;  %vm51_vm2 = vweird.f32 %v1344_v11  ;;  %v178_v47 = vand.u32 %v1508_v46, %v163_v44 }
   0xa   :  { %v48_v13 = vsub.f32 1.0, %v47_v12  ;;  %186 = vmatpush.bf16.msra.mxu0 %v178_v47 }
   0xb   :  { %40 = vadd.xlane.f32.xlu1 %v39_v8  ;;  %34 = vadd.xlane.f32.xlu0 %v33_v9 }
   0xc   :  { %v49_v14 = vmul.f32 %v1344_v11, %v48_v13 }
   0xe   :  { %v50_v15 = vadd.f32 %v1344_v11, %v49_v14  ;;  %187 = vmatpush.bf16.msra.mxu0 %v1181_v50 }
  0x10   :  { %v1467_v16 = vsel %vm51_vm2, %v1344_v11, %v50_v15 }
  0x76   :  { %v38_v17 = vpop.xlane.xlu1 %37  ;;  %v32_v18 = vpop.xlane.xlu0 %31 }
  0x77   :  { %v55_v19 = vmul.f32 %v1467_v16, %v38_v17  ;;  %v53_v20 = vmul.f32 %v1467_v16, %v32_v18  ;;  %v45_v25 = vpop.xlane.xlu2 %44 }
  0x78   :  { %v57_v32 = vmul.f32 %v1467_v16, %v45_v25 }
  0x79   :  { %v1472_v21 = vsub.f32 %v1435_v0, %v55_v19  ;;  %v1475_v22 = vsub.f32 %v1440_v1, %v53_v20 }
  0x7a   :  { %v1493_v35 = vsub.f32 %v1449_v4, %v57_v32 }
  0x7b   :  { %v65_v23 = vmul.f32 %v1472_v21, %v1472_v21  ;;  %v63_v24 = vmul.f32 %v1475_v22, %v1475_v22 }
  0x7c   :  { %v67_v40 = vmul.f32 %v1493_v35, %v1493_v35 }
  0x7d   :  { %v74_v26 = vsel %vm29_vm0, %v65_v23, 0.0  ;;  %v68_v27 = vsel %vm29_vm0, %v63_v24, 0.0 }
  0x7e   :  { %75 = vadd.xlane.f32.xlu1 %v74_v26  ;;  %v41_v28 = vpop.xlane.xlu1 %40  ;;  %69 = vadd.xlane.f32.xlu2 %v68_v27  ;;  %v35_v29 = vpop.xlane.xlu0 %34  ;;  %v80_v41 = vsel %vm42_vm1, %v67_v40, 0.0 }
  0x7f   :  { %v56_v30 = vmul.f32 %v1467_v16, %v41_v28  ;;  %v54_v31 = vmul.f32 %v1467_v16, %v35_v29 }
  0x81   :  { %v1487_v33 = vsub.f32 %v1456_v6, %v56_v30  ;;  %v1490_v34 = vsub.f32 %v1461_v7, %v54_v31 }
  0x83   :  { %v66_v36 = vmul.f32 %v1487_v33, %v1487_v33  ;;  %v64_v37 = vmul.f32 %v1490_v34, %v1490_v34 }
  0x85   :  { %v77_v38 = vsel %vm29_vm0, %v66_v36, 0.0  ;;  %v71_v39 = vsel %vm29_vm0, %v64_v37, 0.0 }
  0x86   :  { %78 = vadd.xlane.f32.xlu2 %v77_v38  ;;  %72 = vadd.xlane.f32.xlu0 %v71_v39 }
  0x8e   :  { %81 = vadd.xlane.f32.xlu0 %v80_v41 }
  0xf1   :  { %v70_v51 = vpop.xlane.xlu2 %69  ;;  %v76_v54 = vpop.xlane.xlu1 %75 }
  0xf2   :  { %v83_v52 = vmul.f32 %v70_v51, %v1467_v16  ;;  %v85_v55 = vmul.f32 %v76_v54, %v1467_v16 }
  0xf4   :  { %v88_v53 = vadd.f32 1e-05, %v83_v52  ;;  %v90_v63 = vadd.f32 1e-05, %v85_v55 }
  0xf6   :  { %1345 = vrsqrt.f32 %v88_v53  ;;  %vm99_vm5 = vweird.f32 %v88_v53  ;;  %vm119_vm12 = vweird.f32 %v90_v63 }
  0xf9   :  { %v79_v56 = vpop.xlane.xlu2 %78  ;;  %v73_v57 = vpop.xlane.xlu0 %72 }
  0xfa   :  { %v86_v58 = vmul.f32 %v79_v56, %v1467_v16  ;;  %v84_v59 = vmul.f32 %v73_v57, %v1467_v16 }
  0xfc   :  { %v91_v60 = vadd.f32 1e-05, %v86_v58  ;;  %v89_v61 = vadd.f32 1e-05, %v84_v59  ;;  %v1346_v62 = vpop.eup %1345 }
  0xfd   :  { %v94_v2 = vmul.f32 %v1346_v62, %v88_v53  ;;  %vm100_vm4 = vweird.f32 %v1346_v62 }
  0xfe   :  { %1347 = vrsqrt.f32 %v91_v60  ;;  %vm101_vm7 = vmor %vm99_vm5, %vm100_vm4  ;;  %vm109_vm8 = vweird.f32 %v89_v61  ;;  %vm129_vm10 = vweird.f32 %v91_v60 }
  0xff   :  { %1349 = vrsqrt.f32 %v89_v61  ;;  %v95_v3 = vmul.f32 %v1346_v62, %v94_v2 }
 0x100   :  { %1351 = vrsqrt.f32 %v90_v63 }
 0x101   :  { %v96_v5 = vmul.f32 0.5, %v95_v3  ;;  %v82_v9 = vpop.xlane.xlu0 %81 }
 0x102   :  { %v87_v14 = vmul.f32 %v82_v9, %v1467_v16 }
 0x103   :  { %v97_v11 = vsub.f32 1.5, %v96_v5 }
 0x104   :  { %v1348_v8 = vpop.eup %1347  ;;  %v92_v23 = vadd.f32 1e-05, %v87_v14  ;;  %v1555_v14 = vld [vmem:[%s2109_s4 + $0x10] sm:$0xff] }
 0x105   :  { %v1350_v10 = vpop.eup %1349  ;;  %v124_v15 = vmul.f32 %v1348_v8, %v91_v60  ;;  %v98_v19 = vmul.f32 %v1346_v62, %v97_v11  ;;  %vm130_vm11 = vweird.f32 %v1348_v8 }
 0x106   :  { %v104_v12 = vmul.f32 %v1350_v10, %v89_v61  ;;  %v1352_v13 = vpop.eup %1351  ;;  %vm110_vm6 = vweird.f32 %v1350_v10  ;;  %1353 = vrsqrt.f32 %v92_v23  ;;  %vm131_vm14 = vmor %vm129_vm10, %vm130_vm11  ;;  %vm139_vm2 = vweird.f32 %v92_v23 }
 0x107   :  { %v114_v18 = vmul.f32 %v1352_v13, %v90_v63  ;;  %v125_v24 = vmul.f32 %v1348_v8, %v124_v15  ;;  %v102_v28 = vsel %vm101_vm7, %v1346_v62, %v98_v19  ;;  %vm111_vm9 = vmor %vm109_vm8, %vm110_vm6  ;;  %vm120_vm13 = vweird.f32 %v1352_v13 }
 0x108   :  { %v105_v17 = vmul.f32 %v1350_v10, %v104_v12  ;;  %v143_v30 = vmul.f32 %v102_v28, %v1475_v22  ;;  %vm121_vm15 = vmor %vm119_vm12, %vm120_vm13  ;;  %vm261_vm6 = vcmask 277504   ;;  %vm274_vm7 = vcmask 271360  }
 0x109   :  { %v115_v26 = vmul.f32 %v1352_v13, %v114_v18  ;;  %v126_v29 = vmul.f32 0.5, %v125_v24  ;;  %v1564_v24 = vld [vmem:[%s2109_s4 + $0x8] sm:$0xff]  ;;  %vm446_vm8 = vcmask 556032   ;;  %vm940_vm10 = vcmask 1041408  }
 0x10a   :  { %v106_v20 = vmul.f32 0.5, %v105_v17 }
 0x10b   :  { %v116_v32 = vmul.f32 0.5, %v115_v26  ;;  %v127_v37 = vsub.f32 1.5, %v126_v29 }
 0x10c   :  { %v107_v25 = vsub.f32 1.5, %v106_v20  ;;  %v1354_v38 = vpop.eup %1353 }
 0x10d   :  { %v117_v39 = vsub.f32 1.5, %v116_v32  ;;  %v128_v40 = vmul.f32 %v1348_v8, %v127_v37  ;;  %v134_v41 = vmul.f32 %v1354_v38, %v92_v23  ;;  %vm140_vm4 = vweird.f32 %v1354_v38 }
 0x10e   :  { %v108_v27 = vmul.f32 %v1350_v10, %v107_v25  ;;  %vm141_vm5 = vmor %vm139_vm2, %vm140_vm4  ;;  %v1569_v25 = vld [vmem:[%s2109_s4 + $0x18] sm:$0xff] }
 0x10f   :  { %v118_v42 = vmul.f32 %v1352_v13, %v117_v39  ;;  %v135_v43 = vmul.f32 %v1354_v38, %v134_v41  ;;  %v132_v22 = vsel %vm131_vm14, %v1348_v8, %v128_v40 }
 0x110   :  { %v112_v16 = vsel %vm111_vm9, %v1350_v10, %v108_v27  ;;  %vm453_vm9 = vcmask 549888  }
 0x111   :  { %v144_v31 = vmul.f32 %v112_v16, %v1490_v34  ;;  %v122_v44 = vsel %vm121_vm15, %v1352_v13, %v118_v42  ;;  %v146_v34 = vmul.f32 %v132_v22, %v1487_v33  ;;  %v136_v45 = vmul.f32 0.5, %v135_v43  ;;  %v1328_v33 = vld [vmem:[%s2107_s3 + $0x9] ss:$0 sm:$0xff]  ;;  %v1550_v13 = vld [vmem:[%s2109_s4] sm:$0xff] }
 0x112   :  { %v145_v47 = vmul.f32 %v122_v44, %v1472_v21 }
 0x113   :  { %v148_v36 = vpack.c.bf16 %v144_v31, %v143_v30  ;;  %v137_v49 = vsub.f32 1.5, %v136_v45  ;;  %v210_v31 = vld [vmem:[%s2109_s4 + $0x20] sm:$0x3] }
 0x114   :  { %v149_v48 = vpack.c.bf16 %v146_v34, %v145_v47 }
 0x115   :  { %1182 = vmatmul.msk.bf16.vlgmr.msra.gmra.mxu0 %vm29_vm0, %v148_v36  ;;  %v138_v50 = vmul.f32 %v1354_v38, %v137_v49 }
 0x117   :  { %v142_v51 = vsel %vm141_vm5, %v1354_v38, %v138_v50 }
 0x118   :  { %v147_v52 = vmul.f32 %v142_v51, %v1493_v35 }
 0x11a   :  { %v150_v53 = vpack.c.bf16 %v147_v52, %v147_v52 }
 0x125   :  { %1183 = vmatmul.msk.bf16.gmra.mxu0 %vm29_vm0, %v149_v48 }
 0x135   :  { %1184 = vmatmul.msk.bf16.gmra.mxu0 %vm29_vm0, %v150_v53 }
 0x192   :  { %v189_v54 = vpop.f32.mrf.mxu0 }
 0x193   :  { %v190_v55 = vadd.f32 %v1328_v33, %v189_v54 }
 0x19a   :  { %v191_v21 = vpop.f32.mrf.mxu0 }
 0x19b   :  { %v192_v56 = vadd.f32 %v1328_v33, %v191_v21 }
 0x19d   :  { %v1533_v57 = vpack.c.bf16 %v192_v56, %v190_v55 }
 0x19f   :  { %214 = vrot.lane.b32.xlu0 %v1533_v57, %s1382_s14 }
 0x1a2   :  { %v194_v58 = vpop.f32.mrf.mxu0 }
 0x1a3   :  { %v195_v60 = vadd.f32 %v1328_v33, %v194_v58 }
 0x1aa   :  { %v196_v59 = vpop.f32.mrf.mxu0 }
 0x1ab   :  { %v197_v35 = vadd.f32 %v1328_v33, %v196_v59 }
 0x1ad   :  { %v1536_v61 = vpack.c.bf16 %v197_v35, %v195_v60 }
 0x1af   :  { %216 = vrot.lane.b32.xlu2 %v1536_v61, %s1382_s14 }
 0x1b2   :  { %v199_v62 = vpop.f32.mrf.mxu0 }
 0x1b3   :  { %v200_v63 = vadd.f32 %v1328_v33, %v199_v62 }
 0x1b5   :  { %v205_v2 = vpack.c.bf16 %v200_v63, %v200_v63 }
 0x1b7   :  { %218 = vrot.lane.b32.xlu1 %v205_v2, %s1382_s14 }
 0x1ba   :  { %v201_v3 = vpop.f32.mrf.mxu0 }
 0x209   :  { %v217_v9 = vpop.permute.xlu2 %216 }
 0x20a   :  { %v233_v10 = vsel %vm29_vm0, %v217_v9, 0 }
 0x211   :  { %v215_v11 = vpop.permute.xlu0 %214 }
 0x212   :  { %v230_v12 = vsel %vm29_vm0, %v215_v11, 0 }
 0x229   :  { %v219_v5 = vpop.permute.xlu1 %218 }
 0x22a   :  { %v236_v8 = vsel %vm29_vm0, %v219_v5, 0 }
 0x22b   :  { %243 = vmatpush.bf16.xpose.msrb.mxu0 %v236_v8  ;;  %1251 = vmatpush.bf16.xpose.msra.mxu1 %v236_v8 }
 0x233   :  { %244 = vmatpush.bf16.xpose.msrb.mxu0 %v233_v10  ;;  %1252 = vmatpush.bf16.xpose.msra.mxu1 %v233_v10 }
 0x23b   :  { %245 = vmatpush.bf16.xpose.msrb.mxu0 %v230_v12  ;;  %1253 = vmatpush.bf16.xpose.msra.mxu1 %v230_v12  ;;  %v1597_v12 = vld [vmem:[%s2109_s4 + $0x20] sm:$0x3] }
 0x23c   :  { %2122 = vst [vmem:[#allocation4_spill] sm:$0xff] %v1597_v12 }
 0x242   :  { %1185 = vmatmul.msk.bf16.vlgmr.msrb.gmra.mxu0 %vm29_vm0, %v1533_v57  ;;  %1186 = vmatmul.msk.bf16.vlgmr.msra.gmra.mxu1 %vm29_vm0, %v1536_v61 }
 0x252   :  { %1187 = vmatmul.msk.bf16.gmra.mxu1 %vm29_vm0, %v205_v2 }
 0x2bf   :  { %v247_v15 = vpop.f32.mrf.mxu0  ;;  %v252_v17 = vpop.f32.mrf.mxu1 }
 0x2c0   :  { %v248_v18 = vadd.f32 %v247_v15, %v1550_v13  ;;  %v253_v19 = vadd.f32 %v252_v17, %v1555_v14  ;;  %v1384_v15 = vmov 38   ;;  %v1385_v17 = vmov 40  }
 0x2c1   :  { %1276 = vset.pattern.permute.xlu1 %v1384_v15  ;;  %1282 = vset.pattern.permute.xlu0 %v1384_v15 }
 0x2c2   :  { %v268_v20 = vsel %vm261_vm6, %v253_v19, -inf  ;;  %v262_v23 = vsel %vm261_vm6, %v248_v18, -inf }
 0x2c3   :  { %269 = vmax.xlane.f32.xlu0 %v268_v20  ;;  %263 = vmax.xlane.f32.xlu2 %v262_v23  ;;  %v1387_v20 = vmov 41   ;;  %v1388_v23 = vmov 39  }
 0x2c4   :  { %1277 = vset.pattern.permute.xlu2 %v1388_v23 }
 0x2c7   :  { %v249_v26 = vpop.f32.mrf.mxu0  ;;  %v254_v27 = vpop.f32.mrf.mxu1 }
 0x2c8   :  { %v250_v28 = vadd.f32 %v249_v26, %v1564_v24  ;;  %v255_v29 = vadd.f32 %v254_v27, %v1569_v25 }
 0x2ca   :  { %v265_v16 = vsel %vm261_vm6, %v250_v28, -inf  ;;  %v271_v30 = vsel %vm261_vm6, %v255_v29, -inf }
 0x2cb   :  { %266 = vmax.xlane.f32.xlu1 %v265_v16  ;;  %272 = vmax.xlane.f32.xlu2 %v271_v30 }
 0x2cf   :  { %v257_v32 = vpop.f32.mrf.mxu1 }
 0x2d0   :  { %v258_v36 = vadd.f32 %v257_v32, %v210_v31 }
 0x2d2   :  { %v275_v37 = vsel %vm274_vm7, %v258_v36, -inf }
 0x2d3   :  { %276 = vmax.xlane.f32.xlu1 %v275_v37 }
 0x2d7   :  { %v259_v38 = vpop.f32.mrf.mxu1 }
 0x2d8   :  { %v1389_v38 = vmov 43  }
 0x2ec   :  { %325 = vrot.lane.b32.xlu1 %v205_v2, %s1383_s25 }
 0x336   :  { %v264_v39 = vpop.xlane.xlu2 %263  ;;  %v270_v21 = vpop.xlane.xlu0 %269 }
 0x337   :  { %v278_v40 = vsub.f32 %v248_v18, %v264_v39  ;;  %v280_v55 = vsub.f32 %v253_v19, %v270_v21  ;;  %v1386_v18 = vmov 37   ;;  %v1390_v39 = vmov 44  }
 0x339   :  { %v283_v41 = vmul.f32 1.442695, %v278_v40  ;;  %v287_v56 = vmul.f32 1.442695, %v280_v55  ;;  %v374_v40 = vld [vmem:[%s2108_s1 + $0x1c] sm:$0x1] }
 0x33b   :  { %1355 = vpow2.f32 %v283_v41  ;;  %v382_v41 = vunpack.c.l.b16 %v374_v40 }
 0x33e   :  { %v267_v42 = vpop.xlane.xlu1 %266  ;;  %v273_v43 = vpop.xlane.xlu2 %272 }
 0x33f   :  { %v279_v22 = vsub.f32 %v250_v28, %v267_v42  ;;  %v281_v44 = vsub.f32 %v255_v29, %v273_v43  ;;  %v1391_v42 = vmov 42   ;;  %v384_v43 = vpack.c.b16 %v382_v41, %v382_v41 }
 0x341   :  { %v285_v34 = vmul.f32 1.442695, %v279_v22  ;;  %v289_v45 = vmul.f32 1.442695, %v281_v44  ;;  %v1356_v47 = vpop.eup %1355  ;;  %v396_v22 = vand.u32 %v384_v43, %v1508_v46  ;;  %v1392_v44 = vmov 45  }
 0x342   :  { %v293_v48 = vsel %vm261_vm6, %v1356_v47, 0.0 }
 0x343   :  { %1357 = vpow2.f32 %v285_v34  ;;  %294 = vadd.xlane.f32.xlu0 %v293_v48  ;;  %404 = vmatpush.bf16.msra.mxu3 %v396_v22  ;;  %v1193_v34 = vld [vmem:[%s2108_s1 + $0x4] sm:$0xf] }
 0x344   :  { %1359 = vpow2.f32 %v289_v45  ;;  %v1241_v45 = vld [vmem:[%s2108_s1 + $0xc] sm:$0xf0] }
 0x345   :  { %1361 = vpow2.f32 %v287_v56 }
 0x346   :  { %v277_v53 = vpop.xlane.xlu1 %276 }
 0x347   :  { %v282_v58 = vsub.f32 %v258_v36, %v277_v53 }
 0x349   :  { %v1358_v49 = vpop.eup %1357  ;;  %v291_v60 = vmul.f32 1.442695, %v282_v58 }
 0x34a   :  { %v1580_v50 = vpop.eup %1359  ;;  %v296_v51 = vsel %vm261_vm6, %v1358_v49, 0.0 }
 0x34b   :  { %297 = vadd.xlane.f32.xlu2 %v296_v51  ;;  %v302_v52 = vsel %vm261_vm6, %v1580_v50, 0.0  ;;  %v1362_v59 = vpop.eup %1361  ;;  %1363 = vpow2.f32 %v291_v60 }
 0x34c   :  { %303 = vadd.xlane.f32.xlu1 %v302_v52  ;;  %v299_v35 = vsel %vm261_vm6, %v1362_v59, 0.0 }
 0x351   :  { %v1589_v62 = vpop.eup %1363 }
 0x357   :  { %323 = vrot.lane.b32.xlu0 %v1536_v61, %s1383_s25  ;;  %v305_v61 = vsel %vm274_vm7, %v1589_v62, 0.0 }
 0x35e   :  { %v326_v54 = vpop.permute.xlu1 %325 }
 0x35f   :  { %v339_v33 = vsel %vm174_vm3, %v326_v54, 0 }
 0x360   :  { %346 = vmatpush.bf16.msra.mxu2 %v339_v33 }
 0x363   :  { %321 = vrot.lane.b32.xlu2 %v1533_v57, %s1383_s25 }
 0x365   :  { %536 = vperm.xlu1 %1276, %v1597_v12  }
 0x36d   :  { %1278 = vset.pattern.permute.xlu1 %v1385_v17 }
 0x36e   :  { %620 = vperm.xlu1 %1278, %v1597_v12  }
 0x376   :  { %1280 = vset.pattern.permute.xlu1 %v1386_v18 }
 0x377   :  { %489 = vperm.xlu1 %1280, %v1569_v25  }
 0x37f   :  { %1284 = vset.pattern.permute.xlu1 %v1387_v20 }
 0x380   :  { %662 = vperm.xlu1 %1284, %v1597_v12  }
 0x381   :  { %300 = vadd.xlane.f32.xlu0 %v299_v35 }
 0x388   :  { %1286 = vset.pattern.permute.xlu1 %v1388_v23 }
 0x389   :  { %574 = vperm.xlu1 %1286, %v1569_v25  }
 0x38c   :  { %306 = vadd.xlane.f32.xlu2 %v305_v61 }
 0x391   :  { %1288 = vset.pattern.permute.xlu1 %v1386_v18 }
 0x392   :  { %479 = vperm.xlu1 %1288, %v1564_v24  }
 0x395   :  { %532 = vperm.xlu0 %1282, %v1569_v25  }
 0x39a   :  { %1290 = vset.pattern.permute.xlu1 %v1384_v15 }
 0x39b   :  { %524 = vperm.xlu1 %1290, %v1564_v24  }
 0x39d   :  { %1283 = vset.pattern.permute.xlu0 %v1386_v18 }
 0x39e   :  { %494 = vperm.xlu0 %1283, %v1597_v12  }
 0x3a3   :  { %1293 = vset.pattern.permute.xlu1 %v1389_v38 }
 0x3a4   :  { %578 = vperm.xlu2 %1277, %v1597_v12   ;;  %746 = vperm.xlu1 %1293, %v1597_v12  }
 0x3a6   :  { %474 = vperm.xlu0 %1283, %v1550_v13  }
 0x3ac   :  { %1279 = vset.pattern.permute.xlu2 %v1386_v18  ;;  %1295 = vset.pattern.permute.xlu1 %v1388_v23 }
 0x3ad   :  { %484 = vperm.xlu2 %1279, %v1555_v14   ;;  %566 = vperm.xlu1 %1295, %v1564_v24  }
 0x3ae   :  { %1292 = vset.pattern.permute.xlu0 %v1385_v17 }
 0x3af   :  { %616 = vperm.xlu0 %1292, %v1569_v25  }
 0x3b5   :  { %1281 = vset.pattern.permute.xlu2 %v1384_v15  ;;  %1298 = vset.pattern.permute.xlu1 %v1390_v39 }
 0x3b6   :  { %v295_v2 = vpop.xlane.xlu0 %294  ;;  %528 = vperm.xlu2 %1281, %v1555_v14   ;;  %788 = vperm.xlu1 %1298, %v1597_v12  }
 0x3b7   :  { %1297 = vset.pattern.permute.xlu0 %v1387_v20 }
 0x3b8   :  { %658 = vperm.xlu0 %1297, %v1569_v25  }
 0x3be   :  { %v298_v63 = vpop.xlane.xlu2 %297  ;;  %1285 = vset.pattern.permute.xlu2 %v1388_v23  ;;  %1300 = vset.pattern.permute.xlu1 %v1385_v17 }
 0x3bf   :  { %1365 = vrcp.f32 %v298_v63  ;;  %v304_v19 = vpop.xlane.xlu1 %303  ;;  %570 = vperm.xlu2 %1285, %v1555_v14   ;;  %608 = vperm.xlu1 %1300, %v1564_v24  }
 0x3c0   :  { %1367 = vrcp.f32 %v295_v2  ;;  %1302 = vset.pattern.permute.xlu0 %v1391_v42 }
 0x3c1   :  { %1369 = vrcp.f32 %v304_v19  ;;  %700 = vperm.xlu0 %1302, %v1569_v25  }
 0x3c5   :  { %v1366_v57 = vpop.eup %1365 }
 0x3c6   :  { %v1368_v5 = vpop.eup %1367  ;;  %v314_v8 = vmul.f32 %v1366_v57, %v1358_v49  ;;  %v322_v9 = vpop.permute.xlu2 %321 }
 0x3c7   :  { %v313_v10 = vmul.f32 %v1368_v5, %v1356_v47  ;;  %v1370_v27 = vpop.eup %1369  ;;  %1287 = vset.pattern.permute.xlu2 %v1391_v42  ;;  %1303 = vset.pattern.permute.xlu1 %v1392_v44  ;;  %v1194_v47 = vor.u32 %v1241_v45, %v1193_v34 }
 0x3c8   :  { %v316_v16 = vmul.f32 %v1370_v27, %v1580_v50  ;;  %704 = vperm.xlu2 %1287, %v1597_v12   ;;  %830 = vperm.xlu1 %1303, %v1597_v12  }
 0x3c9   :  { %v324_v3 = vpop.permute.xlu0 %323  ;;  %v318_v11 = vpack.c.bf16 %v314_v8, %v313_v10  ;;  %405 = vmatpush.bf16.msra.mxu3 %v1194_v47  ;;  %1307 = vset.pattern.permute.xlu0 %v1389_v38  ;;  %v1788_v47 = vld [vmem:[%s2107_s3] ss:$0 sm:$0xff] }
 0x3ca   :  { %347 = vmatpush.bf16.msra.mxu2 %v324_v3  ;;  %742 = vperm.xlu0 %1307, %v1569_v25  }
 0x3ce   :  { %348 = vmatpush.bf16.msra.mxu2 %v322_v9 }
 0x3d0   :  { %1289 = vset.pattern.permute.xlu2 %v1384_v15  ;;  %1305 = vset.pattern.permute.xlu1 %v1387_v20 }
 0x3d1   :  { %1188 = vmatmul.msk.bf16.vlgmr.msra.gmra.mxu2 %vm261_vm6, %v318_v11  ;;  %520 = vperm.xlu2 %1289, %v1550_v13  }
 0x3d2   :  { %650 = vperm.xlu1 %1305, %v1564_v24   ;;  %730 = vperm.xlu0 %1307, %v1550_v13  }
 0x3d7   :  { %v1708_v56 = vpop.permute.xlu1 %536 }
 0x3d9   :  { %1291 = vset.pattern.permute.xlu2 %v1385_v17 }
 0x3da   :  { %612 = vperm.xlu2 %1291, %v1555_v14   ;;  %1308 = vset.pattern.permute.xlu1 %v1391_v42 }
 0x3db   :  { %688 = vperm.xlu1 %1308, %v1550_v13   ;;  %1314 = vset.pattern.permute.xlu0 %v1392_v44 }
 0x3dc   :  { %826 = vperm.xlu0 %1314, %v1569_v25  }
 0x3e0   :  { %v1719_v60 = vpop.permute.xlu1 %620 }
 0x3e2   :  { %1294 = vset.pattern.permute.xlu2 %v1388_v23 }
 0x3e3   :  { %562 = vperm.xlu2 %1294, %v1550_v13   ;;  %1310 = vset.pattern.permute.xlu1 %v1390_v39 }
 0x3e4   :  { %780 = vperm.xlu1 %1310, %v1555_v14  }
 0x3eb   :  { %1296 = vset.pattern.permute.xlu2 %v1387_v20 }
 0x3ec   :  { %654 = vperm.xlu2 %1296, %v1555_v14   ;;  %1312 = vset.pattern.permute.xlu1 %v1389_v38 }
 0x3ed   :  { %734 = vperm.xlu1 %1312, %v1564_v24  }
 0x3f4   :  { %v301_v26 = vpop.xlane.xlu0 %300  ;;  %1299 = vset.pattern.permute.xlu2 %v1385_v17 }
 0x3f5   :  { %1371 = vrcp.f32 %v301_v26  ;;  %604 = vperm.xlu2 %1299, %v1550_v13   ;;  %1315 = vset.pattern.permute.xlu1 %v1390_v39 }
 0x3f6   :  { %772 = vperm.xlu1 %1315, %v1550_v13  }
 0x3fb   :  { %v1372_v28 = vpop.eup %1371 }
 0x3fc   :  { %v315_v29 = vmul.f32 %v1372_v28, %v1362_v59 }
 0x3fd   :  { %1301 = vset.pattern.permute.xlu2 %v1391_v42 }
 0x3fe   :  { %v319_v31 = vpack.c.bf16 %v316_v16, %v315_v29  ;;  %696 = vperm.xlu2 %1301, %v1555_v14   ;;  %1317 = vset.pattern.permute.xlu1 %v1392_v44 }
 0x3ff   :  { %v307_v30 = vpop.xlane.xlu2 %306  ;;  %814 = vperm.xlu1 %1317, %v1550_v13  }
 0x400   :  { %1189 = vmatmul.msk.bf16.gmra.mxu2 %vm261_vm6, %v319_v31  ;;  %1373 = vrcp.f32 %v307_v30 }
 0x406   :  { %v1374_v32 = vpop.eup %1373  ;;  %1304 = vset.pattern.permute.xlu2 %v1387_v20 }
 0x407   :  { %v317_v36 = vmul.f32 %v1374_v32, %v1589_v62  ;;  %646 = vperm.xlu2 %1304, %v1550_v13   ;;  %v1706_v21 = vpop.permute.xlu2 %578  ;;  %v1755_v10 = vpop.permute.xlu0 %532 }
 0x409   :  { %v320_v37 = vpack.c.bf16 %v317_v36, %v317_v36 }
 0x40f   :  { %1306 = vset.pattern.permute.xlu2 %v1389_v38  ;;  %v1715_v58 = vpop.permute.xlu2 %484 }
 0x410   :  { %1190 = vmatmul.msk.bf16.gmra.mxu2 %vm261_vm6, %v320_v37  ;;  %738 = vperm.xlu2 %1306, %v1555_v14   ;;  %v1762_v27 = vpop.permute.xlu0 %494 }
 0x418   :  { %1309 = vset.pattern.permute.xlu2 %v1391_v42 }
 0x419   :  { %692 = vperm.xlu2 %1309, %v1564_v24  }
 0x421   :  { %1311 = vset.pattern.permute.xlu2 %v1390_v39 }
 0x422   :  { %784 = vperm.xlu2 %1311, %v1569_v25   ;;  %v1724_v25 = vpop.permute.xlu2 %528 }
 0x42a   :  { %1313 = vset.pattern.permute.xlu2 %v1392_v44 }
 0x42b   :  { %822 = vperm.xlu2 %1313, %v1555_v14   ;;  %v1730_v14 = vpop.permute.xlu2 %570 }
 0x433   :  { %1316 = vset.pattern.permute.xlu2 %v1390_v39  ;;  %v1734_v62 = vpop.permute.xlu2 %704  ;;  %v475_v39 = vpop.permute.xlu0 %474 }
 0x434   :  { %776 = vperm.xlu2 %1316, %v1564_v24   ;;  %2128 = vst [vmem:[#allocation10_spill] sm:$0xff] %v1734_v62 }
 0x43b   :  { %v521_v63 = vpop.permute.xlu2 %520  ;;  %v1775_v43 = vpop.permute.xlu0 %616 }
 0x43c   :  { %1318 = vset.pattern.permute.xlu2 %v1392_v44 }
 0x43d   :  { %818 = vperm.xlu2 %1318, %v1564_v24   ;;  %v1751_v24 = vld [vmem:[%s2107_s3 + $0xa] ss:$0 sm:$0xff] }
 0x443   :  { %v1740_v57 = vpop.permute.xlu2 %612  ;;  %v1781_v34 = vpop.permute.xlu0 %658 }
 0x44b   :  { %v1744_v5 = vpop.permute.xlu2 %562 }
 0x453   :  { %v1753_v9 = vpop.permute.xlu2 %654 }
 0x454   :  { %v350_v48 = vpop.f32.mrf.mxu2 }
 0x455   :  { %v1671_v50 = vadd.f32 %v350_v48, %v1440_v1  ;;  %v1393_v1 = vmov 0.0   ;;  %v1793_v48 = vld [vmem:[%s2107_s3 + $0x1] ss:$0 sm:$0xff] }
 0x456   :  { %448 = vst.msk [vmem:[#allocation2 + $0x28] sm:$0xff] %vm446_vm8, %v1393_v1 }
 0x457   :  { %2123 = vst [vmem:[#allocation5_spill] sm:$0xff] %v1671_v50 }
 0x458   :  { %447 = vst.msk [vmem:[#allocation2] sm:$0xff] %vm446_vm8, %v1393_v1 }
 0x45b   :  { %v1760_v23 = vpop.permute.xlu2 %604 }
 0x45c   :  { %v352_v49 = vpop.f32.mrf.mxu2 }
 0x45d   :  { %v1674_v51 = vadd.f32 %v352_v49, %v1461_v7 }
 0x45f   :  { %2124 = vst [vmem:[#allocation6_spill] sm:$0xff] %v1674_v51  ;;  %v369_v52 = vpack.c.bf16 %v1674_v51, %v1671_v50 }
 0x461   :  { %1195 = vmatmul.msk.bf16.vlgmr.msra.gmra.mxu3 %vm29_vm0, %v369_v52 }
 0x463   :  { %v1768_v38 = vpop.permute.xlu2 %696 }
 0x46b   :  { %v1773_v42 = vpop.permute.xlu2 %646 }
 0x473   :  { %v1779_v44 = vpop.permute.xlu2 %738 }
 0x483   :  { %v355_v7 = vpop.f32.mrf.mxu2 }
 0x484   :  { %v1696_v54 = vadd.f32 %v355_v7, %v1435_v0 }
 0x486   :  { %2125 = vst [vmem:[#allocation7_spill] sm:$0xff] %v1696_v54 }
 0x48b   :  { %v357_v53 = vpop.f32.mrf.mxu2 }
 0x48c   :  { %v1699_v13 = vadd.f32 %v357_v53, %v1456_v6 }
 0x48e   :  { %2126 = vst [vmem:[#allocation8_spill] sm:$0xff] %v1699_v13  ;;  %v370_v33 = vpack.c.bf16 %v1699_v13, %v1696_v54 }
 0x490   :  { %1196 = vmatmul.msk.bf16.gmra.mxu3 %vm29_vm0, %v370_v33  ;;  %v1797_v33 = vpop.permute.xlu2 %692 }
 0x493   :  { %v360_v55 = vpop.f32.mrf.mxu2 }
 0x494   :  { %v1712_v0 = vadd.f32 %v360_v55, %v1449_v4  ;;  %v1726_v4 = vpop.permute.xlu1 %489 }
 0x496   :  { %2127 = vst [vmem:[#allocation9_spill] sm:$0xff] %v1712_v0  ;;  %v371_v59 = vpack.c.bf16 %v1712_v0, %v1712_v0 }
 0x49b   :  { %v362_v6 = vpop.f32.mrf.mxu2 }
 0x49c   :  { %v1732_v35 = vpop.permute.xlu1 %662  ;;  %v1803_v6 = vld [vmem:[%s2107_s3 + $0x2] ss:$0 sm:$0xff] }
 0x4a0   :  { %1197 = vmatmul.msk.bf16.gmra.mxu3 %vm29_vm0, %v371_v59  ;;  %v1805_v59 = vpop.permute.xlu0 %700 }
 0x4a4   :  { %v1736_v61 = vpop.permute.xlu1 %574 }
 0x4ac   :  { %v1738_v2 = vpop.permute.xlu1 %479 }
 0x4b4   :  { %v1742_v3 = vpop.permute.xlu1 %524 }
 0x4bc   :  { %v1746_v8 = vpop.permute.xlu1 %746 }
 0x4bd   :  { %2129 = vst [vmem:[#allocation11_spill] sm:$0xff] %v1746_v8 }
 0x4c4   :  { %v1757_v15 = vpop.permute.xlu1 %566 }
 0x4cc   :  { %v1765_v16 = vpop.permute.xlu1 %788 }
 0x4cd   :  { %2130 = vst [vmem:[#allocation12_spill] sm:$0xff] %v1765_v16 }
 0x4d4   :  { %v1770_v41 = vpop.permute.xlu1 %608 }
 0x4dc   :  { %v1777_v22 = vpop.permute.xlu1 %830 }
 0x4dd   :  { %2131 = vst [vmem:[#allocation13_spill] sm:$0xff] %v1777_v22 }
 0x4e4   :  { %v407_v11 = vpop.f32.mrf.mxu3  ;;  %v1783_v45 = vpop.permute.xlu1 %650 }
 0x4e5   :  { %v408_v17 = vadd.f32 %v1751_v24, %v407_v11 }
 0x4e7   :  { %v421_v18 = vadd.f32 3.0, %v408_v17 }
 0x4e9   :  { %v426_v19 = vmax.f32 %v421_v18, 0.0 }
 0x4eb   :  { %v431_v20 = vmin.f32 %v426_v19, 6.0 }
 0x4ec   :  { %v409_v26 = vpop.f32.mrf.mxu3  ;;  %v689_v18 = vpop.permute.xlu1 %688 }
 0x4ed   :  { %v436_v28 = vmul.f32 0.16666667, %v431_v20  ;;  %v410_v29 = vadd.f32 %v1751_v24, %v409_v26 }
 0x4ef   :  { %v441_v30 = vmul.f32 %v436_v28, %v408_v17  ;;  %v422_v31 = vadd.f32 3.0, %v410_v29 }
 0x4f1   :  { %449 = vst.msk [vmem:[#allocation2 + $0x8] sm:$0xff] %vm446_vm8, %v441_v30  ;;  %v427_v32 = vmax.f32 %v422_v31, 0.0  ;;  %v1813_v31 = vld [vmem:[%s2107_s3 + $0x3] ss:$0 sm:$0xff] }
 0x4f3   :  { %v432_v36 = vmin.f32 %v427_v32, 6.0 }
 0x4f5   :  { %v437_v37 = vmul.f32 0.16666667, %v432_v36 }
 0x4f7   :  { %v442_v40 = vmul.f32 %v437_v37, %v410_v29 }
 0x4f8   :  { %v455_v49 = vld [vmem:[#allocation2 + $0x3] sm:$0xff] }
 0x4f9   :  { %450 = vst.msk [vmem:[#allocation2 + $0x10] sm:$0xff] %vm446_vm8, %v442_v40  ;;  %v507_v52 = vld [vmem:[#allocation2 + $0x4] sm:$0xff]  ;;  %v467_v1 = vmul.f32 %v1788_v47, %v455_v49 }
 0x4fa   :  { %v514_v7 = vmul.f32 %v1793_v48, %v507_v52  ;;  %v549_v11 = vld [vmem:[#allocation2 + $0x5] sm:$0xff] }
 0x4fb   :  { %v497_v19 = vmul.f32 %v475_v39, %v467_v1  ;;  %v556_v30 = vmul.f32 %v1803_v6, %v549_v11  ;;  %v591_v32 = vld [vmem:[#allocation2 + $0x7] sm:$0xff] }
 0x4fc   :  { %v539_v20 = vmul.f32 %v521_v63, %v514_v7  ;;  %v598_v7 = vmul.f32 %v1813_v31, %v591_v32  ;;  %v633_v11 = vld [vmem:[#allocation2 + $0x8] sm:$0xff] }
 0x4fd   :  { %v581_v1 = vmul.f32 %v1744_v5, %v556_v30  ;;  %v1835_v5 = vld [vmem:[%s2107_s3 + $0x5] ss:$0 sm:$0xff] }
 0x4fe   :  { %v544_v37 = vadd.f32 %v539_v20, %v497_v19  ;;  %v1828_v19 = vpop.permute.xlu2 %784  ;;  %v623_v51 = vmul.f32 %v1760_v23, %v598_v7 }
 0x4ff   :  { %2132 = vst [vmem:[#allocation14_spill] sm:$0xff] %v1828_v19 }
 0x500   :  { %v1807_v26 = vld [vmem:[#allocation2 + $0xc] sm:$0xff]  ;;  %v586_v13 = vadd.f32 %v581_v1, %v544_v37 }
 0x501   :  { %v717_v28 = vld [vmem:[#allocation2 + $0xb] sm:$0xff]  ;;  %v515_v63 = vmul.f32 %v1793_v48, %v1807_v26 }
 0x502   :  { %v468_v49 = vmul.f32 %v1788_v47, %v717_v28  ;;  %v592_v0 = vld [vmem:[#allocation2 + $0xf] sm:$0xff]  ;;  %v628_v50 = vadd.f32 %v623_v51, %v586_v13 }
 0x503   :  { %v540_v32 = vmul.f32 %v1742_v3, %v515_v63  ;;  %v599_v7 = vmul.f32 %v1813_v31, %v592_v0 }
 0x504   :  { %v498_v30 = vmul.f32 %v1738_v2, %v468_v49 }
 0x506   :  { %v545_v49 = vadd.f32 %v540_v32, %v498_v30 }
 0x513   :  { %v412_v53 = vpop.f32.mrf.mxu3 }
 0x514   :  { %v413_v55 = vadd.f32 %v1751_v24, %v412_v53  ;;  %v1824_v53 = vld [vmem:[%s2107_s3 + $0x4] ss:$0 sm:$0xff] }
 0x515   :  { %v640_v37 = vmul.f32 %v1824_v53, %v633_v11  ;;  %v634_v11 = vld [vmem:[#allocation2 + $0x10] sm:$0xff] }
 0x516   :  { %v423_v17 = vadd.f32 3.0, %v413_v55  ;;  %v641_v0 = vmul.f32 %v1824_v53, %v634_v11  ;;  %v763_v11 = vld [vmem:[#allocation2 + $0x2c] sm:$0x3] }
 0x518   :  { %v428_v29 = vmax.f32 %v423_v17, 0.0  ;;  %v1826_v17 = vld [vmem:[#allocation2 + $0xd] sm:$0xff] }
 0x51a   :  { %v433_v36 = vmin.f32 %v428_v29, 6.0 }
 0x51b   :  { %v414_v40 = vpop.f32.mrf.mxu3 }
 0x51c   :  { %v438_v39 = vmul.f32 0.16666667, %v433_v36  ;;  %v415_v52 = vadd.f32 %v1751_v24, %v414_v40  ;;  %v1830_v36 = vpop.permute.xlu0 %742  ;;  %v675_v40 = vld [vmem:[#allocation2 + $0x9] sm:$0xff] }
 0x51d   :  { %v682_v2 = vmul.f32 %v1835_v5, %v675_v40 }
 0x51e   :  { %v443_v20 = vmul.f32 %v438_v39, %v413_v55  ;;  %v424_v29 = vadd.f32 3.0, %v415_v52  ;;  %v1841_v55 = vpop.permute.xlu1 %780  ;;  %v557_v39 = vmul.f32 %v1803_v6, %v1826_v17 }
 0x51f   :  { %2133 = vst [vmem:[#allocation15_spill] sm:$0xff] %v1841_v55  ;;  %v707_v30 = vmul.f32 %v689_v18, %v682_v2 }
 0x520   :  { %451 = vst.msk [vmem:[#allocation2 + $0x18] sm:$0xff] %vm446_vm8, %v443_v20  ;;  %v429_v54 = vmax.f32 %v424_v29, 0.0  ;;  %v665_v29 = vmul.f32 %v1773_v42, %v640_v37  ;;  %v582_v23 = vmul.f32 %v1757_v15, %v557_v39  ;;  %v1857_v37 = vpop.permute.xlu2 %822 }
 0x521   :  { %2134 = vst [vmem:[#allocation16_spill] sm:$0xff] %v1857_v37 }
 0x522   :  { %v434_v1 = vmin.f32 %v429_v54, 6.0  ;;  %v1854_v54 = vld [vmem:[%s2107_s3 + $0x6] ss:$0 sm:$0xff]  ;;  %v670_v40 = vadd.f32 %v665_v29, %v628_v50  ;;  %v587_v32 = vadd.f32 %v582_v23, %v545_v49  ;;  %v624_v50 = vmul.f32 %v1770_v41, %v599_v7  ;;  %v1871_v49 = vld [vmem:[%s2107_s3 + $0x7] ss:$0 sm:$0xff] }
 0x523   :  { %v417_v3 = vpop.f32.mrf.mxu3  ;;  %v724_v42 = vmul.f32 %v1854_v54, %v717_v28  ;;  %v1877_v41 = vld [vmem:[%s2107_s3 + $0x8] ss:$0 sm:$0xff] }
 0x524   :  { %v439_v63 = vmul.f32 0.16666667, %v434_v1  ;;  %v418_v20 = vadd.f32 %v1751_v24, %v417_v3  ;;  %v721_v3 = vld [vmem:[#allocation2 + $0x2b] sm:$0x3] }
 0x525   :  { %v1882_v8 = vmul.f32 %v1854_v54, %v721_v3 }
 0x526   :  { %v444_v51 = vmul.f32 %v439_v63, %v415_v52  ;;  %v425_v13 = vadd.f32 3.0, %v418_v20  ;;  %v731_v52 = vpop.permute.xlu0 %730  ;;  %v735_v7 = vpop.permute.xlu1 %734 }
 0x527   :  { %v676_v1 = vld [vmem:[#allocation2 + $0x11] sm:$0xff] }
 0x528   :  { %v718_v12 = vld [vmem:[#allocation2 + $0x13] sm:$0xff]  ;;  %452 = vst.msk [vmem:[#allocation2 + $0x20] sm:$0xff] %vm446_vm8, %v444_v51  ;;  %v430_v15 = vmax.f32 %v425_v13, 0.0  ;;  %v683_v63 = vmul.f32 %v1835_v5, %v676_v1  ;;  %v712_v51 = vadd.f32 %v707_v30, %v670_v40  ;;  %v629_v13 = vadd.f32 %v624_v50, %v587_v32 }
 0x529   :  { %v760_v24 = vld [vmem:[#allocation2 + $0x14] sm:$0xff]  ;;  %v469_v18 = vmul.f32 %v1788_v47, %v718_v12  ;;  %v749_v1 = vmul.f32 %v731_v52, %v724_v42  ;;  %v1888_v40 = vmul.f32 %v1871_v49, %v763_v11  ;;  %v725_v3 = vmul.f32 %v1854_v54, %v718_v12 }
 0x52a   :  { %v1861_v39 = vld [vmem:[#allocation2 + $0x15] sm:$0xff]  ;;  %v516_v2 = vmul.f32 %v1793_v48, %v760_v24  ;;  %v435_v29 = vmin.f32 %v430_v15, 6.0  ;;  %v666_v15 = vmul.f32 %v1783_v45, %v641_v0 }
 0x52b   :  { %v558_v28 = vmul.f32 %v1803_v6, %v1861_v39  ;;  %v593_v23 = vld [vmem:[#allocation2 + $0x17] sm:$0xff]  ;;  %v419_v46 = vpop.f32.mrf.mxu3  ;;  %v499_v22 = vmul.f32 %v1715_v58, %v469_v18  ;;  %v708_v58 = vmul.f32 %v1797_v33, %v683_v63  ;;  %v1895_v32 = vadd.f32 %v749_v1, %v712_v51 }
 0x52c   :  { %v541_v16 = vmul.f32 %v1724_v25, %v516_v2  ;;  %v440_v37 = vmul.f32 0.16666667, %v435_v29  ;;  %v600_v19 = vmul.f32 %v1813_v31, %v593_v23  ;;  %v1892_v46 = vmul.f32 %v1871_v49, %v1807_v26  ;;  %v635_v30 = vld [vmem:[#allocation2 + $0x18] sm:$0xff] }
 0x52d   :  { %v583_v55 = vmul.f32 %v1730_v14, %v558_v28  ;;  %v671_v14 = vadd.f32 %v666_v15, %v629_v13  ;;  %v642_v12 = vmul.f32 %v1824_v53, %v635_v30  ;;  %v777_v28 = vpop.permute.xlu2 %776 }
 0x52e   :  { %v546_v62 = vadd.f32 %v541_v16, %v499_v22  ;;  %v445_v25 = vmul.f32 %v440_v37, %v418_v20  ;;  %v1899_v16 = vmul.f32 %v1877_v41, %v1826_v17  ;;  %v767_v17 = vmul.f32 %v1871_v49, %v760_v24 }
 0x52f   :  { %v458_v22 = vld [vmem:[#allocation2 + $0x1b] sm:$0xff]  ;;  %v459_v50 = vld [vmem:[#allocation2 + $0x23] sm:$0x3]  ;;  %v553_v11 = vld [vmem:[#allocation2 + $0x25] sm:$0x3]  ;;  %v667_v30 = vmul.f32 %v1753_v9, %v642_v12 }
 0x530   :  { %v510_v45 = vld [vmem:[#allocation2 + $0x1c] sm:$0xff]  ;;  %v588_v0 = vadd.f32 %v583_v55, %v546_v62  ;;  %454 = vst.msk [vmem:[#allocation2 + $0x28] sm:$0x3] %vm453_vm9, %v445_v25  ;;  %v470_v26 = vmul.f32 %v1788_v47, %v458_v22  ;;  %v471_v18 = vmul.f32 %v1788_v47, %v459_v50  ;;  %v511_v2 = vld [vmem:[#allocation2 + $0x24] sm:$0x3]  ;;  %v625_v62 = vmul.f32 %v1740_v57, %v600_v19 }
 0x531   :  { %v552_v42 = vld [vmem:[#allocation2 + $0x1d] sm:$0xff]  ;;  %v517_v33 = vmul.f32 %v1793_v48, %v510_v45  ;;  %v713_v55 = vadd.f32 %v708_v58, %v671_v14  ;;  %v518_v47 = vmul.f32 %v1793_v48, %v511_v2  ;;  %v750_v57 = vmul.f32 %v735_v7, %v725_v3  ;;  %v773_v58 = vpop.permute.xlu1 %772 }
 0x532   :  { %v559_v20 = vmul.f32 %v1803_v6, %v552_v42  ;;  %v594_v37 = vld [vmem:[#allocation2 + $0x1f] sm:$0xff]  ;;  %v500_v63 = vmul.f32 %v1726_v4, %v470_v26  ;;  %v501_v24 = vmul.f32 %v1762_v27, %v471_v18  ;;  %v630_v1 = vadd.f32 %v625_v62, %v588_v0 }
 0x533   :  { %v636_v52 = vld [vmem:[#allocation2 + $0x20] sm:$0xff]  ;;  %v542_v29 = vmul.f32 %v1755_v10, %v517_v33  ;;  %v601_v23 = vmul.f32 %v1813_v31, %v594_v37  ;;  %v809_v19 = vmul.f32 %v1877_v41, %v1861_v39  ;;  %v543_v10 = vmul.f32 %v1708_v56, %v518_v47 }
 0x534   :  { %v677_v51 = vld [vmem:[#allocation2 + $0x19] sm:$0xff]  ;;  %v643_v13 = vmul.f32 %v1824_v53, %v636_v52  ;;  %v584_v4 = vmul.f32 %v1736_v61, %v559_v20  ;;  %v560_v25 = vmul.f32 %v1803_v6, %v553_v11  ;;  %v792_v27 = vmul.f32 %v777_v28, %v767_v17 }
 0x535   :  { %v547_v15 = vadd.f32 %v542_v29, %v500_v63  ;;  %v684_v14 = vmul.f32 %v1835_v5, %v677_v51  ;;  %v626_v48 = vmul.f32 %v1775_v43, %v601_v23  ;;  %v726_v7 = vmul.f32 %v1854_v54, %v458_v22 }
 0x536   :  { %v755_v0 = vadd.f32 %v750_v57, %v713_v55  ;;  %v668_v39 = vmul.f32 %v1781_v34, %v643_v13  ;;  %v548_v20 = vadd.f32 %v543_v10, %v501_v24  ;;  %v672_v56 = vadd.f32 %v667_v30, %v630_v1  ;;  %v805_v24 = vld [vmem:[#allocation2 + $0x2d] sm:$0x3] }
 0x537   :  { %v589_v26 = vadd.f32 %v584_v4, %v547_v15  ;;  %v678_v3 = vld [vmem:[#allocation2 + $0x21] sm:$0xff]  ;;  %v709_v43 = vmul.f32 %v1768_v38, %v684_v14  ;;  %v585_v22 = vmul.f32 %v1706_v21, %v560_v25  ;;  %v679_v34 = vld [vmem:[#allocation2 + $0x29] sm:$0x3]  ;;  %v768_v2 = vmul.f32 %v1871_v49, %v510_v45 }
 0x538   :  { %v720_v61 = vld [vmem:[#allocation2 + $0x23] sm:$0xff]  ;;  %v685_v6 = vmul.f32 %v1835_v5, %v678_v3  ;;  %v810_v62 = vmul.f32 %v1877_v41, %v552_v42  ;;  %v686_v42 = vmul.f32 %v1835_v5, %v679_v34  ;;  %v797_v51 = vadd.f32 %v792_v27, %v755_v0  ;;  %v2138_v27 = vld [vmem:[#allocation16_spill] sm:$0xff] }
 0x539   :  { %v762_v33 = vld [vmem:[#allocation2 + $0x24] sm:$0xff]  ;;  %v631_v37 = vadd.f32 %v626_v48, %v589_v26  ;;  %v727_v9 = vmul.f32 %v1854_v54, %v720_v61  ;;  %v751_v54 = vmul.f32 %v1779_v44, %v726_v7  ;;  %v590_v29 = vadd.f32 %v585_v22, %v548_v20  ;;  %v815_v4 = vpop.permute.xlu1 %814 }
 0x53a   :  { %v804_v52 = vld [vmem:[#allocation2 + $0x25] sm:$0xff]  ;;  %v710_v55 = vmul.f32 %v1805_v59, %v685_v6  ;;  %v769_v28 = vmul.f32 %v1871_v49, %v762_v33  ;;  %v714_v11 = vadd.f32 %v709_v43, %v672_v56  ;;  %v791_v59 = vmul.f32 %v773_v58, %v1892_v46  ;;  %v827_v49 = vpop.permute.xlu0 %826  ;;  %v2140_v33 = vld [vmem:[#allocation12_spill] sm:$0xff] }
 0x53b   :  { %v595_v50 = vld [vmem:[#allocation2 + $0x27] sm:$0x3]  ;;  %v673_v12 = vadd.f32 %v668_v39, %v631_v37  ;;  %v811_v63 = vmul.f32 %v1877_v41, %v804_v52  ;;  %v752_v45 = vmul.f32 %v1830_v36, %v727_v9  ;;  %v835_v26 = vmul.f32 %v2138_v27, %v810_v62  ;;  %v1339_v39 = vld [vmem:[%s2107_s3 + $0xb] ss:$0 sm:$0xff] }
 0x53c   :  { %v637_v17 = vld [vmem:[#allocation2 + $0x28] sm:$0x3]  ;;  %v602_v18 = vmul.f32 %v1813_v31, %v595_v50  ;;  %v819_v31 = vpop.permute.xlu2 %818  ;;  %v756_v57 = vadd.f32 %v751_v54, %v714_v11  ;;  %v796_v36 = vadd.f32 %v791_v59, %v1895_v32  ;;  %v812_v7 = vmul.f32 %v1877_v41, %v805_v24  ;;  %v2141_v52 = vld [vmem:[#allocation13_spill] sm:$0xff] }
 0x53d   :  { %v644_v21 = vmul.f32 %v1824_v53, %v637_v17  ;;  %v715_v23 = vadd.f32 %v710_v55, %v673_v12  ;;  %v2135_v1 = vld [vmem:[#allocation14_spill] sm:$0xff]  ;;  %v2136_v53 = vld [vmem:[#allocation15_spill] sm:$0xff]  ;;  %v834_v10 = vmul.f32 %v819_v31, %v809_v19  ;;  %v836_v58 = vmul.f32 %v827_v49, %v811_v63  ;;  %v1243_v49 = vld [vmem:[%s2110_s2 + $0x14] sm:$0xf0] }
 0x53e   :  { %v627_v38 = vmul.f32 %v1719_v60, %v602_v18  ;;  %v794_v60 = vmul.f32 %v2135_v1, %v769_v28  ;;  %v793_v15 = vmul.f32 %v2136_v53, %v768_v2  ;;  %v2137_v25 = vld [vmem:[#allocation10_spill] sm:$0xff]  ;;  %v833_v32 = vmul.f32 %v815_v4, %v1899_v16  ;;  %v1245_v18 = vld [vmem:[%s2110_s2 + $0x34] sm:$0xf0] }
 0x53f   :  { %v669_v44 = vmul.f32 %v1732_v35, %v644_v21  ;;  %v757_v47 = vadd.f32 %v752_v45, %v715_v23  ;;  %v711_v30 = vmul.f32 %v2137_v25, %v686_v42  ;;  %v2139_v35 = vld [vmem:[#allocation11_spill] sm:$0xff]  ;;  %v839_v19 = vadd.f32 %v834_v10, %v797_v51 }
 0x540   :  { %v632_v13 = vadd.f32 %v627_v38, %v590_v29  ;;  %v798_v14 = vadd.f32 %v793_v15, %v756_v57  ;;  %v753_v48 = vmul.f32 %v2139_v35, %v1882_v8  ;;  %v795_v20 = vmul.f32 %v2140_v33, %v1888_v40  ;;  %v907_v8 = vld [vmem:[%s2110_s2 + $0x40] sm:$0x3]  ;;  %v1213_v40 = vld [vmem:[%s2110_s2 + $0x30] sm:$0xf]  ;;  %v1244_v38 = vld [vmem:[%s2110_s2 + $0x24] sm:$0xf0] }
 0x541   :  { %v799_v46 = vadd.f32 %v794_v60, %v757_v47  ;;  %v838_v37 = vadd.f32 %v833_v32, %v796_v36  ;;  %v927_v9 = vunpack.c.l.b16 %v907_v8  ;;  %v837_v50 = vmul.f32 %v2141_v52, %v812_v7  ;;  %v1209_v29 = vld [vmem:[%s2110_s2 + $0x20] sm:$0xf]  ;;  %v1205_v51 = vld [vmem:[%s2110_s2 + $0x10] sm:$0xf]  ;;  %v1242_v7 = vld [vmem:[%s2110_s2 + $0x4] sm:$0xf0] }
 0x542   :  { %v674_v5 = vadd.f32 %v669_v44, %v632_v13  ;;  %v840_v61 = vadd.f32 %v835_v26, %v798_v14  ;;  %v846_v16 = vadd.f32 %v1339_v39, %v839_v19  ;;  %v1214_v28 = vor.u32 %v1245_v18, %v1213_v40  ;;  %v875_v35 = vld [vmem:[%s2111_s5] sm:$0x1]  ;;  %v1218_v8 = vld [vmem:[%s2108_s1 + $0x8] sm:$0xf] }
 0x543   :  { %v841_v3 = vadd.f32 %v836_v58, %v799_v46  ;;  %v932_v22 = vpack.c.b16 %v927_v9, %v927_v9  ;;  %v845_v2 = vadd.f32 %v1339_v39, %v838_v37  ;;  %v1210_v42 = vor.u32 %v1244_v38, %v1209_v29  ;;  %v1246_v37 = vld [vmem:[%s2108_s1 + $0x10] sm:$0xf0]  ;;  %v1375_v9 = vld [vmem:[%s2109_s4 + $0x8] sm:$0xff]  ;;  %v1376_v52 = vld [vmem:[%s2109_s4] sm:$0xff] }
 0x544   :  { %v716_v0 = vadd.f32 %v711_v30, %v674_v5  ;;  %v847_v6 = vadd.f32 %v1339_v39, %v840_v61  ;;  %v851_v54 = vadd.f32 3.0, %v846_v16  ;;  %v1206_v1 = vor.u32 %v1243_v49, %v1205_v51  ;;  %v1250_v29 = vld [vmem:[%s2110_s2 + $0x38] sm:$0xf0]  ;;  %v1247_v49 = vld [vmem:[%s2110_s2 + $0x8] sm:$0xf0] }
 0x545   :  { %v848_v41 = vadd.f32 %v1339_v39, %v841_v3  ;;  %v942_v12 = vsel %vm940_vm10, %v932_v22, 0  ;;  %v850_v31 = vadd.f32 3.0, %v845_v2  ;;  %v2142_v3 = vld [vmem:[#allocation3_spill] sm:$0xff]  ;;  %v1340_v22 = vld [vmem:[%s2107_s3 + $0xc] ss:$0 sm:$0xff] }
 0x546   :  { %v758_v56 = vadd.f32 %v753_v48, %v716_v0  ;;  %v852_v62 = vadd.f32 3.0, %v847_v6  ;;  %947 = vmatpush.bf16.msrb.mxu3 %v942_v12  ;;  %v856_v11 = vmax.f32 %v851_v54, 0.0  ;;  %v1201_v48 = vld [vmem:[%s2110_s2] sm:$0xf]  ;;  %v1074_v12 = vld [vmem:[%s2110_s2 + $0x44] sm:$0x3] }
 0x547   :  { %v853_v43 = vadd.f32 3.0, %v848_v41  ;;  %v855_v44 = vmax.f32 %v850_v31, 0.0  ;;  %v1202_v0 = vor.u32 %v1242_v7, %v1201_v48  ;;  %v1231_v31 = vld [vmem:[%s2110_s2 + $0x24] sm:$0xf] }
 0x548   :  { %v800_v17 = vadd.f32 %v795_v20, %v758_v56  ;;  %v857_v23 = vmax.f32 %v852_v62, 0.0  ;;  %v861_v60 = vmin.f32 %v856_v11, 6.0  ;;  %v1248_v11 = vld [vmem:[%s2110_s2 + $0x18] sm:$0xf0] }
 0x549   :  { %v858_v63 = vmax.f32 %v853_v43, 0.0  ;;  %v860_v15 = vmin.f32 %v855_v44, 6.0  ;;  %v2143_v43 = vld [vmem:[#allocation4_spill] sm:$0xff] }
 0x54a   :  { %v842_v34 = vadd.f32 %v837_v50, %v800_v17  ;;  %948 = vmatpush.bf16.msrb.mxu3 %v1214_v28  ;;  %v862_v24 = vmin.f32 %v857_v23, 6.0  ;;  %v866_v5 = vmul.f32 0.16666667, %v861_v60  ;;  %v1395_v50 = vmov 36   ;;  %v1377_v17 = vld [vmem:[%s2109_s4 + $0x18] sm:$0xff] }
 0x54b   :  { %v863_v59 = vmin.f32 %v858_v63, 6.0  ;;  %v865_v46 = vmul.f32 0.16666667, %v860_v15  ;;  %1321 = vset.pattern.permute.xlu2 %v1395_v50  ;;  %v1235_v63 = vld [vmem:[%s2110_s2 + $0x34] sm:$0xf] }
 0x54c   :  { %v849_v55 = vadd.f32 %v1339_v39, %v842_v34  ;;  %v867_v4 = vmul.f32 0.16666667, %v862_v24  ;;  %v1991_v14 = vmul.f32 %v866_v5, %v846_v16  ;;  %v961_v39 = vld [vmem:[%s2108_s1 + $0x20] sm:$0x1]  ;;  %1028 = vperm.xlu2 %1321, %v1376_v52   ;;  %v1378_v16 = vld [vmem:[%s2109_s4 + $0x10] sm:$0xff] }
 0x54d   :  { %v868_v57 = vmul.f32 0.16666667, %v863_v59  ;;  %v1993_v27 = vmul.f32 %v865_v46, %v845_v2  ;;  %v969_v32 = vunpack.c.l.b16 %v961_v39  ;;  %v1249_v23 = vld [vmem:[%s2110_s2 + $0x28] sm:$0xf0]  ;;  %v1223_v59 = vld [vmem:[%s2110_s2 + $0x4] sm:$0xf] }
 0x54e   :  { %v854_v21 = vadd.f32 3.0, %v849_v55  ;;  %949 = vmatpush.bf16.msrb.mxu3 %v1210_v42  ;;  %v1987_v30 = vmul.f32 %v867_v4, %v847_v6  ;;  %v1394_v6 = vmov 35   ;;  %v1227_v42 = vld [vmem:[%s2110_s2 + $0x14] sm:$0xf]  ;;  %v1224_v24 = vor.u32 %v1247_v49, %v1223_v59  ;;  %v2146_v49 = vld [vmem:[#allocation6_spill] sm:$0xff] }
 0x54f   :  { %v1984_v10 = vmul.f32 %v868_v57, %v848_v41  ;;  %v876_v26 = vpack.c.bf16 %v1991_v14, %v1993_v27  ;;  %v971_v19 = vpack.c.b16 %v969_v32, %v969_v32  ;;  %v1219_v41 = vor.u32 %v1246_v37, %v1218_v8  ;;  %1320 = vset.pattern.permute.xlu1 %v1394_v6 }
 0x550   :  { %v859_v45 = vmax.f32 %v854_v21, 0.0  ;;  %1001 = vperm.xlu1 %1320, %v1375_v9   ;;  %1319 = vset.pattern.permute.xlu0 %v1394_v6  ;;  %v1236_v21 = vor.u32 %v1250_v29, %v1235_v63  ;;  %v1228_v51 = vor.u32 %v1248_v11, %v1227_v42  ;;  %v2144_v29 = vld [vmem:[#allocation5_spill] sm:$0xff] }
 0x551   :  { %v877_v58 = vpack.c.bf16 %v1984_v10, %v1987_v30  ;;  %v977_v61 = vand.u32 %v971_v19, %v2142_v3  ;;  %997 = vperm.xlu0 %1319, %v1376_v52   ;;  %v2145_v11 = vld [vmem:[#allocation9_spill] sm:$0xff] }
 0x552   :  { %v864_v13 = vmin.f32 %v859_v45, 6.0  ;;  %950 = vmatpush.bf16.msrb.mxu3 %v1206_v1  ;;  %v1232_v45 = vor.u32 %v1249_v23, %v1231_v31  ;;  %v1341_v1 = vld [vmem:[%s2107_s3 + $0xd] ss:$0 sm:$0xff] }
 0x553   :  { %985 = vmatpush.bf16.msrb.mxu2 %v977_v61 }
 0x554   :  { %v869_v47 = vmul.f32 0.16666667, %v864_v13  ;;  %1323 = vset.pattern.permute.xlu2 %v1394_v6 }
 0x555   :  { %1005 = vperm.xlu2 %1323, %v1378_v16  }
 0x556   :  { %v1980_v53 = vmul.f32 %v869_v47, %v849_v55  ;;  %951 = vmatpush.bf16.msrb.mxu3 %v1202_v0  ;;  %v1094_v55 = vunpack.c.l.b16 %v1074_v12  ;;  %v1396_v47 = vmov 34   ;;  %v1342_v12 = vld [vmem:[%s2107_s3 + $0xe] ss:$0 sm:$0xff] }
 0x557   :  { %986 = vmatpush.bf16.msrb.mxu2 %v1219_v41 }
 0x558   :  { %v878_v36 = vpack.c.bf16 %v1980_v53, %v1980_v53  ;;  %1322 = vset.pattern.permute.xlu1 %v1395_v50  ;;  %v1099_v28 = vpack.c.b16 %v1094_v55, %v1094_v55 }
 0x559   :  { %1032 = vperm.xlu1 %1322, %v1375_v9   ;;  %1009 = vperm.xlu0 %1319, %v1377_v17  }
 0x55a   :  { %v883_v25 = vsel %vm174_vm3, %v878_v36, 0  ;;  %v1114_v54 = vsel %vm940_vm10, %v1099_v28, 0  ;;  %v1379_v36 = vld [vmem:[%s2109_s4 + $0x20] sm:$0x3] }
 0x55b   :  { %890 = vmatpush.bf16.msra.mxu0 %v883_v25  ;;  %1119 = vmatpush.bf16.msrb.mxu1 %v1114_v54 }
 0x55c   :  { %1254 = vmatpush.bf16.msra.mxu3 %v1114_v54 }
 0x55d   :  { %1324 = vset.pattern.permute.xlu2 %v1395_v50 }
 0x55e   :  { %1040 = vperm.xlu2 %1324, %v1377_v17  }
 0x55f   :  { %891 = vmatpush.bf16.msra.mxu0 %v877_v58  ;;  %1120 = vmatpush.bf16.msrb.mxu1 %v1236_v21 }
 0x560   :  { %1255 = vmatpush.bf16.msra.mxu3 %v1236_v21 }
 0x561   :  { %1036 = vperm.xlu1 %1322, %v1378_v16   ;;  %1013 = vperm.xlu0 %1319, %v2143_v43  }
 0x563   :  { %892 = vmatpush.bf16.msra.mxu0 %v876_v26  ;;  %1121 = vmatpush.bf16.msrb.mxu1 %v1232_v45 }
 0x564   :  { %1256 = vmatpush.bf16.msra.mxu3 %v1232_v45 }
 0x566   :  { %1198 = vmatmul.msk.bf16.vlgmr.msra.gmra.mxu0 %vm261_vm6, %v875_v35  ;;  %1325 = vset.pattern.permute.xlu2 %v1396_v47 }
 0x567   :  { %1122 = vmatpush.bf16.msrb.mxu1 %v1228_v51  ;;  %1140 = vperm.xlu2 %1325, %v1376_v52  }
 0x568   :  { %1257 = vmatpush.bf16.msra.mxu3 %v1228_v51 }
 0x569   :  { %1044 = vperm.xlu1 %1322, %v2143_v43   ;;  %1326 = vset.pattern.permute.xlu0 %v1396_v47 }
 0x56a   :  { %1144 = vperm.xlu0 %1326, %v1375_v9  }
 0x56b   :  { %1123 = vmatpush.bf16.msrb.mxu1 %v1224_v24 }
 0x56c   :  { %1258 = vmatpush.bf16.msra.mxu3 %v1224_v24 }
 0x56f   :  { %1152 = vperm.xlu2 %1325, %v1377_v17  }
 0x571   :  { %1327 = vset.pattern.permute.xlu1 %v1396_v47 }
 0x572   :  { %1148 = vperm.xlu1 %1327, %v1378_v16  }
 0x57a   :  { %1156 = vperm.xlu1 %1327, %v1379_v36  }
 0x5a6   :  { %v1029_v5 = vpop.permute.xlu2 %1028 }
 0x5af   :  { %v1006_v32 = vpop.permute.xlu2 %1005 }
 0x5b8   :  { %v1041_v16 = vpop.permute.xlu2 %1040 }
 0x5c1   :  { %v1141_v28 = vpop.permute.xlu2 %1140 }
 0x5c2   :  { %v1002_v38 = vpop.permute.xlu1 %1001 }
 0x5c3   :  { %v998_v13 = vpop.permute.xlu0 %997 }
 0x5c9   :  { %v1153_v36 = vpop.permute.xlu2 %1152 }
 0x5cb   :  { %v1033_v44 = vpop.permute.xlu1 %1032  ;;  %v1010_v57 = vpop.permute.xlu0 %1009 }
 0x5d3   :  { %v1037_v4 = vpop.permute.xlu1 %1036  ;;  %v1014_v48 = vpop.permute.xlu0 %1013 }
 0x5db   :  { %v1045_v39 = vpop.permute.xlu1 %1044 }
 0x5dc   :  { %v1145_v45 = vpop.permute.xlu0 %1144 }
 0x5e3   :  { %v894_v33 = vpop.f32.mrf.mxu0 }
 0x5e4   :  { %v898_v20 = vpack.c.bf16 %v894_v33, %v894_v33 }
 0x5e6   :  { %1215 = vmatmul.msk.bf16.vlgmr.msrb.gmra.mxu3 %vm446_vm8, %v898_v20 }
 0x5eb   :  { %v896_v56 = vpop.f32.mrf.mxu0 }
 0x669   :  { %v953_v40 = vpop.f32.mrf.mxu3 }
 0x66a   :  { %v954_v18 = vadd.f32 %v1340_v22, %v953_v40 }
 0x66c   :  { %v957_v34 = vmax.f32 %v954_v18, 0.0 }
 0x66e   :  { %v958_v2 = vpack.c.bf16 %v957_v34, %v957_v34 }
 0x670   :  { %1220 = vmatmul.msk.bf16.vlgmr.msrb.gmra.mxu2 %vm29_vm0, %v958_v2 }
 0x671   :  { %v955_v62 = vpop.f32.mrf.mxu3 }
 0x6f3   :  { %v988_v60 = vpop.f32.mrf.mxu2 }
 0x6f4   :  { %v989_v15 = vadd.f32 %v1341_v1, %v988_v60  ;;  %v2147_v60 = vld [vmem:[#allocation7_spill] sm:$0xff] }
 0x6f6   :  { %v992_v25 = vadd.f32 3.0, %v989_v15 }
 0x6f8   :  { %v993_v46 = vmax.f32 %v992_v25, 0.0  ;;  %v2148_v25 = vld [vmem:[#allocation8_spill] sm:$0xff] }
 0x6fa   :  { %v994_v58 = vmin.f32 %v993_v46, 6.0 }
 0x6fb   :  { %v990_v26 = vpop.f32.mrf.mxu2 }
 0x6fc   :  { %v995_v35 = vmul.f32 0.16666667, %v994_v58 }
 0x6fe   :  { %v1016_v7 = vperm.slane %v995_v35, 0  ;;  %v1047_v0 = vperm.slane %v995_v35, 1 }
 0x700   :  { %v1021_v19 = vmul.f32 %v1016_v7, %v1014_v48  ;;  %v1052_v3 = vmul.f32 %v1047_v0, %v1045_v39  ;;  %v1017_v61 = vmul.f32 %v1016_v7, %v998_v13  ;;  %v1018_v33 = vmul.f32 %v1016_v7, %v1002_v38 }
 0x701   :  { %v1048_v20 = vmul.f32 %v1047_v0, %v1029_v5  ;;  %v1049_v56 = vmul.f32 %v1047_v0, %v1033_v44  ;;  %v1020_v43 = vmul.f32 %v1016_v7, %v1010_v57  ;;  %v1050_v22 = vmul.f32 %v1047_v0, %v1037_v4 }
 0x702   :  { %v1057_v8 = vadd.f32 %v1052_v3, %v1021_v19  ;;  %v1019_v40 = vmul.f32 %v1016_v7, %v1006_v32  ;;  %v1051_v18 = vmul.f32 %v1047_v0, %v1041_v16 }
 0x703   :  { %v1053_v37 = vadd.f32 %v1048_v20, %v1017_v61  ;;  %v1054_v41 = vadd.f32 %v1049_v56, %v1018_v33 }
 0x704   :  { %v1062_v6 = vmul.f32 %v1057_v8, %v1980_v53  ;;  %v1055_v34 = vadd.f32 %v1050_v22, %v1019_v40  ;;  %v1056_v2 = vadd.f32 %v1051_v18, %v1020_v43 }
 0x705   :  { %v1058_v9 = vmul.f32 %v1053_v37, %v1993_v27  ;;  %v1059_v52 = vmul.f32 %v1054_v41, %v1991_v14  ;;  %v1149_v14 = vpop.permute.xlu1 %1148 }
 0x706   :  { %v1065_v50 = vpack.c.bf16 %v1062_v6, %v1062_v6  ;;  %v1060_v62 = vmul.f32 %v1055_v34, %v1987_v30  ;;  %v1061_v53 = vmul.f32 %v1056_v2, %v1984_v10 }
 0x707   :  { %v1063_v17 = vpack.c.bf16 %v1059_v52, %v1058_v9 }
 0x708   :  { %1239 = vmatmul.msk.bf16.vlgmr.msra.gmra.mxu3 %vm446_vm8, %v1065_v50  ;;  %v1064_v27 = vpack.c.bf16 %v1061_v53, %v1060_v62 }
 0x709   :  { %1237 = vmatmul.msk.bf16.vlgmr.msrb.gmra.mxu1 %vm446_vm8, %v1063_v17 }
 0x70d   :  { %v1157_v31 = vpop.permute.xlu1 %1156 }
 0x719   :  { %1238 = vmatmul.msk.bf16.gmra.mxu1 %vm446_vm8, %v1064_v27 }
 0x786   :  { %v1125_v55 = vpop.f32.mrf.mxu1 }
 0x787   :  { %v1126_v54 = vadd.f32 %v1342_v12, %v1125_v55 }
 0x789   :  { %v1159_v63 = vmul.f32 %v1141_v28, %v1126_v54 }
 0x78b   :  { %v1164_v38 = vadd.f32 %v1159_v63, %v2144_v29  ;;  %v1135_v21 = vpop.f32.mrf.mxu3 }
 0x78c   :  { %v1136_v23 = vadd.f32 %v1342_v12, %v1135_v21 }
 0x78d   :  { %1169 = vst.msk [vmem:[%s2112_s6] sm:$0xff] %vm29_vm0, %v1164_v38 }
 0x78e   :  { %v1163_v10 = vmul.f32 %v1157_v31, %v1136_v23  ;;  %v1127_v30 = vpop.f32.mrf.mxu1 }
 0x78f   :  { %v1128_v42 = vadd.f32 %v1342_v12, %v1127_v30 }
 0x790   :  { %v1168_v59 = vadd.f32 %v1163_v10, %v2145_v11 }
 0x791   :  { %v1160_v51 = vmul.f32 %v1145_v45, %v1128_v42 }
 0x792   :  { %1173 = vst.msk [vmem:[%s2112_s6 + $0x20] sm:$0x3] %vm42_vm1, %v1168_v59 }
 0x793   :  { %v1165_v13 = vadd.f32 %v1160_v51, %v2146_v49  ;;  %v1137_v44 = vpop.f32.mrf.mxu3 }
 0x795   :  { %1170 = vst.msk [vmem:[%s2112_s6 + $0x8] sm:$0xff] %vm29_vm0, %v1165_v13 }
 0x796   :  { %v1130_v24 = vpop.f32.mrf.mxu1 }
 0x797   :  { %v1131_v47 = vadd.f32 %v1342_v12, %v1130_v24 }
 0x799   :  { %v1161_v1 = vmul.f32 %v1149_v14, %v1131_v47 }
 0x79b   :  { %v1166_v57 = vadd.f32 %v1161_v1, %v2147_v60 }
 0x79d   :  { %1171 = vst.msk [vmem:[%s2112_s6 + $0x10] sm:$0xff] %vm29_vm0, %v1166_v57 }
 0x79e   :  { %v1132_v15 = vpop.f32.mrf.mxu1 }
 0x79f   :  { %v1133_v4 = vadd.f32 %v1342_v12, %v1132_v15 }
 0x7a1   :  { %v1162_v5 = vmul.f32 %v1153_v36, %v1133_v4 }
 0x7a3   :  { %v1167_v46 = vadd.f32 %v1162_v5, %v2148_v25 }
 0x7a5   :  { %1172 = vst.msk [vmem:[%s2112_s6 + $0x18] sm:$0xff] %vm29_vm0, %v1167_v46 }

</bundles_post_ra>
